<compile_context>
chip_gen: v5e
topology: v5e:2x2
jax: 0.10.0
libtpu: 0.0.40
codegen_flags: <defaults>
</compile_context>

<pallas_src>
import functools
import math

import jax
import jax.numpy as jnp
from jax import lax
from jax.experimental import pallas as pl
from jax.experimental.pallas import tpu as pltpu


def _layernorm(x, gamma, beta, eps=1e-5):
    # x: (R, C) f32; gamma/beta: (1, C) f32
    mu = jnp.mean(x, axis=-1, keepdims=True)
    var = jnp.mean((x - mu) ** 2, axis=-1, keepdims=True)
    return (x - mu) * lax.rsqrt(var + eps) * gamma + beta


def _gelu_exact(x):
    # nn.GELU() default = exact (erf) GELU
    return 0.5 * x * (1.0 + lax.erf(x * (1.0 / math.sqrt(2.0))))


def transformer_encoder_kernel(
    x_ref,                               # (N, C) f32 — full sequence of this batch
    g1_ref, b1_ref,                      # LayerNorm1 gamma/beta       (1, C)  f32
    wq_ref, bq_ref,                      # q projection                (C, C)  bf16 / (1, C) f32
    wk_ref, bk_ref,                      # k projection                (C, C)  bf16 / (1, C) f32
    wv_ref, bv_ref,                      # v projection                (C, C)  bf16 / (1, C) f32
    wproj_ref, bproj_ref,                # attn out proj               (H, hd, C) bf16 / (1, C) f32
    g2_ref, b2_ref,                      # LayerNorm2 gamma/beta       (1, C)  f32
    wfc1_ref, bfc1_ref,                  # mlp fc1                     (C, M)  bf16 / (1, M) f32
    wfc2_ref, bfc2_ref,                  # mlp fc2                     (M, C)  bf16 / (1, C) f32
    o_ref,                               # (TN, C) f32 — query-row tile
    *, num_heads: int, seq_tile: int,
):
    N, C = x_ref.shape
    TN = seq_tile
    hd = C // num_heads
    scale = 1.0 / math.sqrt(hd)
    bf16 = jnp.bfloat16
    f32 = jnp.float32

    t = pl.program_id(1)
    row0 = pl.multiple_of(t * TN, TN)

    # ---- LN1 (f32 elementwise); K/V need the full sequence, Q only the tile ----
    x_full = x_ref[...]                                               # (N, C)
    xn_full_bf = _layernorm(x_full, g1_ref[...], b1_ref[...]).astype(bf16)

    x_q = x_ref[pl.ds(row0, TN), :]                                   # residual rows (f32)
    xn_q_bf = _layernorm(x_q, g1_ref[...], b1_ref[...]).astype(bf16)

    # ---- QKV projections: bf16 operands, f32 accumulation on the MXU ----
    q = jnp.dot(xn_q_bf, wq_ref[...], preferred_element_type=f32) + bq_ref[...]     # (TN, C)
    k = jnp.dot(xn_full_bf, wk_ref[...], preferred_element_type=f32) + bk_ref[...]  # (N, C)
    v = jnp.dot(xn_full_bf, wv_ref[...], preferred_element_type=f32) + bv_ref[...]  # (N, C)
    q_bf = q.astype(bf16)
    k_bf = k.astype(bf16)
    v_bf = v.astype(bf16)

    # ---- per-head attention, accumulated directly into the output projection ----
    # (no kh.T, no concatenate: sum_h ctx_h @ Wproj[h] == concat(ctx) @ Wproj)
    # TODO(synk): pack pairs of heads per MXU call when head_dim < 128 at real sizes.
    acc = jnp.broadcast_to(bproj_ref[...], (TN, C))                   # hoisted bias, f32
    for h in range(num_heads):                                        # static unroll
        sl = slice(h * hd, (h + 1) * hd)
        s = lax.dot_general(q_bf[:, sl], k_bf[:, sl],
                            (((1,), (1,)), ((), ())),                 # contract last dims
                            preferred_element_type=f32) * scale       # (TN, N)
        s_max = jnp.max(s, axis=-1, keepdims=True)
        p = jnp.exp(s - s_max)
        p = p * pl.reciprocal(jnp.sum(p, axis=-1, keepdims=True), approx=True)
        ctx = jnp.dot(p.astype(bf16), v_bf[:, sl],
                      preferred_element_type=f32)                     # (TN, hd)
        acc = acc + jnp.dot(ctx.astype(bf16), wproj_ref[h],
                            preferred_element_type=f32)               # (TN, C)

    x1 = x_q + acc

    # ---- MLP branch: x1 + fc2(gelu(fc1(LN2(x1)))) ----
    # TODO(synk): Dropout(0.1) is identity at inference; no stochastic mask emitted.
    x1n_bf = _layernorm(x1, g2_ref[...], b2_ref[...]).astype(bf16)
    h1 = jnp.dot(x1n_bf, wfc1_ref[...], preferred_element_type=f32) + bfc1_ref[...]
    h1 = _gelu_exact(h1)                                              # f32 on VPU/EUP
    h2 = jnp.dot(h1.astype(bf16), wfc2_ref[...], preferred_element_type=f32) + bfc2_ref[...]

    o_ref[...] = (x1 + h2).astype(o_ref.dtype)


def transformer_encoder(x, params, *, num_heads, seq_tile=128):
    B, N, C = x.shape
    M = params["wfc1"].shape[1]
    hd = C // num_heads
    bf16, f32 = jnp.bfloat16, jnp.float32

    # Sequence tile (query rows). Fall back to full N if it does not divide.
    tn = seq_tile if (seq_tile <= N and N % seq_tile == 0) else N
    nt = N // tn

    # --- weights: bf16 for the MXU; biases / LN params stay f32 ---
    wqkv = params["wqkv"].astype(bf16)                    # (C, 3C)
    bqkv = params["bqkv"].astype(f32)                     # (1, 3C)
    wq, wk, wv = wqkv[:, :C], wqkv[:, C:2 * C], wqkv[:, 2 * C:]
    bq, bk, bv = bqkv[:, :C], bqkv[:, C:2 * C], bqkv[:, 2 * C:]
    wproj = params["wproj"].astype(bf16).reshape(num_heads, hd, C)    # (H, hd, C)

    weight_args = (
        params["g1"].astype(f32), params["b1"].astype(f32),
        wq, bq, wk, bk, wv, bv,
        wproj, params["bproj"].astype(f32),
        params["g2"].astype(f32), params["b2"].astype(f32),
        params["wfc1"].astype(bf16), params["bfc1"].astype(f32),
        params["wfc2"].astype(bf16), params["bfc2"].astype(f32),
    )

    # Rough VMEM budget: single-buffered resident weights + double-buffered
    # activation blocks + in-kernel f32 temporaries; capped at 64 MiB (v7x).
    w_bytes = sum(int(a.size) * a.dtype.itemsize for a in weight_args)
    act_bytes = 4 * (2 * N * C + 2 * tn * C) \
        + 4 * (4 * N * C + tn * N + tn * M + 8 * tn * C)
    vmem_limit = int(min(max(2 * (w_bytes + act_bytes), 32 * 1024 * 1024),
                         64 * 1024 * 1024))

    kernel = functools.partial(transformer_encoder_kernel,
                               num_heads=num_heads, seq_tile=tn)

    def _call(single_buffer_weights: bool):
        def const_spec(shape):
            index_map = lambda b, t: (0,) * len(shape)
            if single_buffer_weights and hasattr(pl, "Buffered"):
                # constant across the grid -> single-buffer halves resident VMEM
                return pl.BlockSpec(shape, index_map, pipeline_mode=pl.Buffered(1))
            return pl.BlockSpec(shape, index_map)

        return pl.pallas_call(
            kernel,
            out_shape=jax.ShapeDtypeStruct((B, N, C), x.dtype),
            grid_spec=pltpu.PrefetchScalarGridSpec(
                num_scalar_prefetch=0,
                grid=(B, nt),
                in_specs=[
                    # full sequence of this batch; block index constant in t,
                    # so it is only re-fetched when b changes. Leading batch
                    # dim squeezed -> kernel sees (N, C).
                    pl.BlockSpec((None, N, C), lambda b, t: (b, 0, 0)),
                    const_spec((1, C)), const_spec((1, C)),               # LN1
                    const_spec((C, C)), const_spec((1, C)),               # q
                    const_spec((C, C)), const_spec((1, C)),               # k
                    const_spec((C, C)), const_spec((1, C)),               # v
                    const_spec((num_heads, hd, C)), const_spec((1, C)),   # proj
                    const_spec((1, C)), const_spec((1, C)),               # LN2
                    const_spec((C, M)), const_spec((1, M)),               # fc1
                    const_spec((M, C)), const_spec((1, C)),               # fc2
                ],
                out_specs=pl.BlockSpec((None, tn, C), lambda b, t: (b, t, 0)),
            ),
            compiler_params=pltpu.CompilerParams(
                dimension_semantics=("parallel", "parallel"),
                vmem_limit_bytes=vmem_limit,
            ),
        )(x.astype(f32), *weight_args)

    try:
        return _call(True)
    except Exception:
        # TODO(synk): pl.Buffered(1) single-buffering unavailable in this jax
        # version; fall back to default double-buffered weight blocks.
        return _call(False)


def _reference(x, p, num_heads):
    """Pure-JAX f32 reference mirroring the PyTorch forward."""
    B, N, C = x.shape
    hd = C // num_heads

    def ln(z, g, b, eps=1e-5):
        mu = jnp.mean(z, axis=-1, keepdims=True)
        var = jnp.mean((z - mu) ** 2, axis=-1, keepdims=True)
        return (z - mu) / jnp.sqrt(var + eps) * g + b

    xn = ln(x, p["g1"], p["b1"])
    qkv = xn @ p["wqkv"] + p["bqkv"]                       # (B, N, 3C)
    qkv = qkv.reshape(B, N, 3, num_heads, hd).transpose(2, 0, 3, 1, 4)
    q, k, v = qkv[0], qkv[1], qkv[2]                       # (B, H, N, hd)
    s = (q @ jnp.swapaxes(k, -2, -1)) / math.sqrt(hd)
    a = jax.nn.softmax(s, axis=-1)
    o = (a @ v).transpose(0, 2, 1, 3).reshape(B, N, C)
    x = x + (o @ p["wproj"] + p["bproj"])
    xn2 = ln(x, p["g2"], p["b2"])
    h = jax.nn.gelu(xn2 @ p["wfc1"] + p["bfc1"], approximate=False)
    return x + (h @ p["wfc2"] + p["bfc2"])


if __name__ == "__main__":
    B, N, C = 2, 8, 32
    num_heads = 4
    mlp_dim = 64

    key = jax.random.PRNGKey(0)
    ks = jax.random.split(key, 9)

    params = {
        "g1": jnp.ones((1, C), jnp.float32),
        "b1": jnp.zeros((1, C), jnp.float32),
        "wqkv": 0.1 * jax.random.normal(ks[0], (C, 3 * C), jnp.float32),
        "bqkv": 0.1 * jax.random.normal(ks[1], (1, 3 * C), jnp.float32),
        "wproj": 0.1 * jax.random.normal(ks[2], (C, C), jnp.float32),
        "bproj": 0.1 * jax.random.normal(ks[3], (1, C), jnp.float32),
        "g2": jnp.ones((1, C), jnp.float32),
        "b2": jnp.zeros((1, C), jnp.float32),
        "wfc1": 0.1 * jax.random.normal(ks[4], (C, mlp_dim), jnp.float32),
        "bfc1": 0.1 * jax.random.normal(ks[5], (1, mlp_dim), jnp.float32),
        "wfc2": 0.1 * jax.random.normal(ks[6], (mlp_dim, C), jnp.float32),
        "bfc2": 0.1 * jax.random.normal(ks[7], (1, C), jnp.float32),
    }

    x = jax.random.normal(ks[8], (B, N, C), jnp.float32)

    out = transformer_encoder(x, params, num_heads=num_heads)
    out = jax.block_until_ready(out)

    ref = _reference(x, params, num_heads)
    assert out.shape == (B, N, C)
    max_err = float(jnp.max(jnp.abs(out - ref)))
    # bf16 matmul inputs + approx reciprocal vs f32 reference -> loose-ish tol
    assert jnp.allclose(out, ref, atol=2e-2, rtol=2e-2), \
        f"mismatch vs reference (max abs err {max_err})"

    print("KERNEL_OK")
</pallas_src>

<mosaic_0001>
module attributes {stable_mosaic.version = 11 : i64} {
  func.func @transformer_encoder_kernel(%arg0: i32, %arg1: i32, %arg2: memref<1x8x32xf32, #tpu.memory_space<vmem>>, %arg3: memref<1x32xf32, #tpu.memory_space<vmem>>, %arg4: memref<1x32xf32, #tpu.memory_space<vmem>>, %arg5: memref<32x32xbf16, #tpu.memory_space<vmem>>, %arg6: memref<1x32xf32, #tpu.memory_space<vmem>>, %arg7: memref<32x32xbf16, #tpu.memory_space<vmem>>, %arg8: memref<1x32xf32, #tpu.memory_space<vmem>>, %arg9: memref<32x32xbf16, #tpu.memory_space<vmem>>, %arg10: memref<1x32xf32, #tpu.memory_space<vmem>>, %arg11: memref<4x8x32xbf16, #tpu.memory_space<vmem>>, %arg12: memref<1x32xf32, #tpu.memory_space<vmem>>, %arg13: memref<1x32xf32, #tpu.memory_space<vmem>>, %arg14: memref<1x32xf32, #tpu.memory_space<vmem>>, %arg15: memref<32x64xbf16, #tpu.memory_space<vmem>>, %arg16: memref<1x64xf32, #tpu.memory_space<vmem>>, %arg17: memref<64x32xbf16, #tpu.memory_space<vmem>>, %arg18: memref<1x32xf32, #tpu.memory_space<vmem>>, %arg19: memref<1x8x32xf32, #tpu.memory_space<vmem>>) attributes {dimension_semantics = [#tpu.dimension_semantics<parallel>, #tpu.dimension_semantics<parallel>], iteration_bounds = array<i64: 2, 1>, scalar_prefetch = 0 : i64, scratch_operands = 0 : i64, tpu.core_type = #tpu.core_type<tc>, window_params = [{transform_indices = @transform_0, window_bounds = array<i64: 1, 8, 32>}, {pipeline_mode = #tpu.pipeline_mode<synchronous>, transform_indices = @transform_1, window_bounds = array<i64: 1, 32>}, {pipeline_mode = #tpu.pipeline_mode<synchronous>, transform_indices = @transform_2, window_bounds = array<i64: 1, 32>}, {pipeline_mode = #tpu.pipeline_mode<synchronous>, transform_indices = @transform_3, window_bounds = array<i64: 32, 32>}, {pipeline_mode = #tpu.pipeline_mode<synchronous>, transform_indices = @transform_4, window_bounds = array<i64: 1, 32>}, {pipeline_mode = #tpu.pipeline_mode<synchronous>, transform_indices = @transform_5, window_bounds = array<i64: 32, 32>}, {pipeline_mode = #tpu.pipeline_mode<synchronous>, transform_indices = @transform_6, window_bounds = array<i64: 1, 32>}, {pipeline_mode = #tpu.pipeline_mode<synchronous>, transform_indices = @transform_7, window_bounds = array<i64: 32, 32>}, {pipeline_mode = #tpu.pipeline_mode<synchronous>, transform_indices = @transform_8, window_bounds = array<i64: 1, 32>}, {pipeline_mode = #tpu.pipeline_mode<synchronous>, transform_indices = @transform_9, window_bounds = array<i64: 4, 8, 32>}, {pipeline_mode = #tpu.pipeline_mode<synchronous>, transform_indices = @transform_10, window_bounds = array<i64: 1, 32>}, {pipeline_mode = #tpu.pipeline_mode<synchronous>, transform_indices = @transform_11, window_bounds = array<i64: 1, 32>}, {pipeline_mode = #tpu.pipeline_mode<synchronous>, transform_indices = @transform_12, window_bounds = array<i64: 1, 32>}, {pipeline_mode = #tpu.pipeline_mode<synchronous>, transform_indices = @transform_13, window_bounds = array<i64: 32, 64>}, {pipeline_mode = #tpu.pipeline_mode<synchronous>, transform_indices = @transform_14, window_bounds = array<i64: 1, 64>}, {pipeline_mode = #tpu.pipeline_mode<synchronous>, transform_indices = @transform_15, window_bounds = array<i64: 64, 32>}, {pipeline_mode = #tpu.pipeline_mode<synchronous>, transform_indices = @transform_16, window_bounds = array<i64: 1, 32>}, {transform_indices = @transform_17, window_bounds = array<i64: 1, 8, 32>}]} {
    %c8_i32 = arith.constant 8 : i32
    %0 = arith.muli %arg1, %c8_i32 : i32
    %1 = tpu.assume_multiple %0, 8 : i32
    %c0 = arith.constant 0 : index
    %c0_0 = arith.constant 0 : index
    %c0_1 = arith.constant 0 : index
    %2 = vector.load %arg2[%c0, %c0_0, %c0_1] : memref<1x8x32xf32, #tpu.memory_space<vmem>>, vector<1x8x32xf32>
    %3 = vector.shape_cast %2 : vector<1x8x32xf32> to vector<8x32xf32>
    %c0_2 = arith.constant 0 : index
    %c0_3 = arith.constant 0 : index
    %4 = vector.load %arg3[%c0_2, %c0_3] : memref<1x32xf32, #tpu.memory_space<vmem>>, vector<1x32xf32>
    %c0_4 = arith.constant 0 : index
    %c0_5 = arith.constant 0 : index
    %5 = vector.load %arg4[%c0_4, %c0_5] : memref<1x32xf32, #tpu.memory_space<vmem>>, vector<1x32xf32>
    %cst = arith.constant dense<0.000000e+00> : vector<8xf32>
    %6 = vector.multi_reduction <add>, %3, %cst [1] : vector<8x32xf32> to vector<8xf32>
    %7 = vector.shape_cast %6 : vector<8xf32> to vector<8x1xf32>
    %cst_6 = arith.constant 3.200000e+01 : f32
    %8 = vector.broadcast %cst_6 : f32 to vector<8x1xf32>
    %9 = arith.divf %7, %8 : vector<8x1xf32>
    %10 = vector.broadcast %9 : vector<8x1xf32> to vector<8x32xf32>
    %11 = arith.subf %3, %10 : vector<8x32xf32>
    %12 = arith.mulf %11, %11 : vector<8x32xf32>
    %cst_7 = arith.constant dense<0.000000e+00> : vector<8xf32>
    %13 = vector.multi_reduction <add>, %12, %cst_7 [1] : vector<8x32xf32> to vector<8xf32>
    %14 = vector.shape_cast %13 : vector<8xf32> to vector<8x1xf32>
    %cst_8 = arith.constant 3.200000e+01 : f32
    %15 = vector.broadcast %cst_8 : f32 to vector<8x1xf32>
    %16 = arith.divf %14, %15 : vector<8x1xf32>
    %17 = vector.broadcast %9 : vector<8x1xf32> to vector<8x32xf32>
    %18 = arith.subf %3, %17 : vector<8x32xf32>
    %cst_9 = arith.constant 9.99999974E-6 : f32
    %19 = vector.broadcast %cst_9 : f32 to vector<8x1xf32>
    %20 = arith.addf %16, %19 : vector<8x1xf32>
    %21 = math.rsqrt %20 : vector<8x1xf32>
    %22 = vector.broadcast %21 : vector<8x1xf32> to vector<8x32xf32>
    %23 = arith.mulf %18, %22 : vector<8x32xf32>
    %24 = vector.broadcast %4 : vector<1x32xf32> to vector<8x32xf32>
    %25 = arith.mulf %23, %24 : vector<8x32xf32>
    %26 = vector.broadcast %5 : vector<1x32xf32> to vector<8x32xf32>
    %27 = arith.addf %25, %26 : vector<8x32xf32>
    %28 = arith.truncf %27 : vector<8x32xf32> to vector<8x32xbf16>
    %c0_10 = arith.constant 0 : index
    %29 = arith.index_cast %1 : i32 to index
    %c0_11 = arith.constant 0 : index
    %30 = vector.load %arg2[%c0_10, %29, %c0_11] : memref<1x8x32xf32, #tpu.memory_space<vmem>>, vector<1x8x32xf32>
    %31 = vector.shape_cast %30 : vector<1x8x32xf32> to vector<8x32xf32>
    %c0_12 = arith.constant 0 : index
    %c0_13 = arith.constant 0 : index
    %32 = vector.load %arg3[%c0_12, %c0_13] : memref<1x32xf32, #tpu.memory_space<vmem>>, vector<1x32xf32>
    %c0_14 = arith.constant 0 : index
    %c0_15 = arith.constant 0 : index
    %33 = vector.load %arg4[%c0_14, %c0_15] : memref<1x32xf32, #tpu.memory_space<vmem>>, vector<1x32xf32>
    %cst_16 = arith.constant dense<0.000000e+00> : vector<8xf32>
    %34 = vector.multi_reduction <add>, %31, %cst_16 [1] : vector<8x32xf32> to vector<8xf32>
    %35 = vector.shape_cast %34 : vector<8xf32> to vector<8x1xf32>
    %cst_17 = arith.constant 3.200000e+01 : f32
    %36 = vector.broadcast %cst_17 : f32 to vector<8x1xf32>
    %37 = arith.divf %35, %36 : vector<8x1xf32>
    %38 = vector.broadcast %37 : vector<8x1xf32> to vector<8x32xf32>
    %39 = arith.subf %31, %38 : vector<8x32xf32>
    %40 = arith.mulf %39, %39 : vector<8x32xf32>
    %cst_18 = arith.constant dense<0.000000e+00> : vector<8xf32>
    %41 = vector.multi_reduction <add>, %40, %cst_18 [1] : vector<8x32xf32> to vector<8xf32>
    %42 = vector.shape_cast %41 : vector<8xf32> to vector<8x1xf32>
    %cst_19 = arith.constant 3.200000e+01 : f32
    %43 = vector.broadcast %cst_19 : f32 to vector<8x1xf32>
    %44 = arith.divf %42, %43 : vector<8x1xf32>
    %45 = vector.broadcast %37 : vector<8x1xf32> to vector<8x32xf32>
    %46 = arith.subf %31, %45 : vector<8x32xf32>
    %cst_20 = arith.constant 9.99999974E-6 : f32
    %47 = vector.broadcast %cst_20 : f32 to vector<8x1xf32>
    %48 = arith.addf %44, %47 : vector<8x1xf32>
    %49 = math.rsqrt %48 : vector<8x1xf32>
    %50 = vector.broadcast %49 : vector<8x1xf32> to vector<8x32xf32>
    %51 = arith.mulf %46, %50 : vector<8x32xf32>
    %52 = vector.broadcast %32 : vector<1x32xf32> to vector<8x32xf32>
    %53 = arith.mulf %51, %52 : vector<8x32xf32>
    %54 = vector.broadcast %33 : vector<1x32xf32> to vector<8x32xf32>
    %55 = arith.addf %53, %54 : vector<8x32xf32>
    %56 = arith.truncf %55 : vector<8x32xf32> to vector<8x32xbf16>
    %c0_21 = arith.constant 0 : index
    %c0_22 = arith.constant 0 : index
    %57 = vector.load %arg5[%c0_21, %c0_22] : memref<32x32xbf16, #tpu.memory_space<vmem>>, vector<32x32xbf16>
    %cst_23 = arith.constant dense<0.000000e+00> : vector<8x32xf32>
    %58 = tpu.matmul %56, %57, %cst_23 {dimension_numbers = #tpu.dot_dimension_numbers<[1], [0], [0], [1], [0, 0, 1, 1], [], []>} : vector<8x32xbf16>, vector<32x32xbf16>, vector<8x32xf32> -> vector<8x32xf32>
    %c0_24 = arith.constant 0 : index
    %c0_25 = arith.constant 0 : index
    %59 = vector.load %arg6[%c0_24, %c0_25] : memref<1x32xf32, #tpu.memory_space<vmem>>, vector<1x32xf32>
    %60 = vector.broadcast %59 : vector<1x32xf32> to vector<8x32xf32>
    %61 = arith.addf %58, %60 : vector<8x32xf32>
    %c0_26 = arith.constant 0 : index
    %c0_27 = arith.constant 0 : index
    %62 = vector.load %arg7[%c0_26, %c0_27] : memref<32x32xbf16, #tpu.memory_space<vmem>>, vector<32x32xbf16>
    %cst_28 = arith.constant dense<0.000000e+00> : vector<8x32xf32>
    %63 = tpu.matmul %28, %62, %cst_28 {dimension_numbers = #tpu.dot_dimension_numbers<[1], [0], [0], [1], [0, 0, 1, 1], [], []>} : vector<8x32xbf16>, vector<32x32xbf16>, vector<8x32xf32> -> vector<8x32xf32>
    %c0_29 = arith.constant 0 : index
    %c0_30 = arith.constant 0 : index
    %64 = vector.load %arg8[%c0_29, %c0_30] : memref<1x32xf32, #tpu.memory_space<vmem>>, vector<1x32xf32>
    %65 = vector.broadcast %64 : vector<1x32xf32> to vector<8x32xf32>
    %66 = arith.addf %63, %65 : vector<8x32xf32>
    %c0_31 = arith.constant 0 : index
    %c0_32 = arith.constant 0 : index
    %67 = vector.load %arg9[%c0_31, %c0_32] : memref<32x32xbf16, #tpu.memory_space<vmem>>, vector<32x32xbf16>
    %cst_33 = arith.constant dense<0.000000e+00> : vector<8x32xf32>
    %68 = tpu.matmul %28, %67, %cst_33 {dimension_numbers = #tpu.dot_dimension_numbers<[1], [0], [0], [1], [0, 0, 1, 1], [], []>} : vector<8x32xbf16>, vector<32x32xbf16>, vector<8x32xf32> -> vector<8x32xf32>
    %c0_34 = arith.constant 0 : index
    %c0_35 = arith.constant 0 : index
    %69 = vector.load %arg10[%c0_34, %c0_35] : memref<1x32xf32, #tpu.memory_space<vmem>>, vector<1x32xf32>
    %70 = vector.broadcast %69 : vector<1x32xf32> to vector<8x32xf32>
    %71 = arith.addf %68, %70 : vector<8x32xf32>
    %72 = arith.truncf %61 : vector<8x32xf32> to vector<8x32xbf16>
    %73 = arith.truncf %66 : vector<8x32xf32> to vector<8x32xbf16>
    %74 = arith.truncf %71 : vector<8x32xf32> to vector<8x32xbf16>
    %c0_36 = arith.constant 0 : index
    %c0_37 = arith.constant 0 : index
    %75 = vector.load %arg12[%c0_36, %c0_37] : memref<1x32xf32, #tpu.memory_space<vmem>>, vector<1x32xf32>
    %76 = vector.shape_cast %75 : vector<1x32xf32> to vector<1x32xf32>
    %77 = vector.broadcast %76 : vector<1x32xf32> to vector<8x32xf32>
    %78 = vector.extract_strided_slice %72 {offsets = [0, 0], sizes = [8, 8], strides = [1, 1]} : vector<8x32xbf16> to vector<8x8xbf16>
    %79 = vector.extract_strided_slice %73 {offsets = [0, 0], sizes = [8, 8], strides = [1, 1]} : vector<8x32xbf16> to vector<8x8xbf16>
    %cst_38 = arith.constant dense<0.000000e+00> : vector<8x8xf32>
    %80 = tpu.matmul %78, %79, %cst_38 {dimension_numbers = #tpu.dot_dimension_numbers<[1], [1], [0], [0], [0, 0, 1, 0], [], []>} : vector<8x8xbf16>, vector<8x8xbf16>, vector<8x8xf32> -> vector<8x8xf32>
    %cst_39 = arith.constant 0.353553385 : f32
    %81 = vector.broadcast %cst_39 : f32 to vector<8x8xf32>
    %82 = arith.mulf %80, %81 : vector<8x8xf32>
    %cst_40 = arith.constant dense<0xFF800000> : vector<8xf32>
    %83 = vector.multi_reduction <maximumf>, %82, %cst_40 [1] : vector<8x8xf32> to vector<8xf32>
    %84 = vector.shape_cast %83 : vector<8xf32> to vector<8x1xf32>
    %85 = vector.broadcast %84 : vector<8x1xf32> to vector<8x8xf32>
    %86 = arith.subf %82, %85 : vector<8x8xf32>
    %87 = math.exp %86 : vector<8x8xf32>
    %cst_41 = arith.constant dense<0.000000e+00> : vector<8xf32>
    %88 = vector.multi_reduction <add>, %87, %cst_41 [1] : vector<8x8xf32> to vector<8xf32>
    %89 = vector.shape_cast %88 : vector<8xf32> to vector<8x1xf32>
    %90 = tpu.reciprocal %89 {approx = true} : vector<8x1xf32> -> vector<8x1xf32>
    %91 = vector.broadcast %90 : vector<8x1xf32> to vector<8x8xf32>
    %92 = arith.mulf %87, %91 : vector<8x8xf32>
    %93 = arith.truncf %92 : vector<8x8xf32> to vector<8x8xbf16>
    %94 = vector.extract_strided_slice %74 {offsets = [0, 0], sizes = [8, 8], strides = [1, 1]} : vector<8x32xbf16> to vector<8x8xbf16>
    %cst_42 = arith.constant dense<0.000000e+00> : vector<8x8xf32>
    %95 = tpu.matmul %93, %94, %cst_42 {dimension_numbers = #tpu.dot_dimension_numbers<[1], [0], [0], [1], [0, 0, 1, 1], [], []>} : vector<8x8xbf16>, vector<8x8xbf16>, vector<8x8xf32> -> vector<8x8xf32>
    %96 = arith.truncf %95 : vector<8x8xf32> to vector<8x8xbf16>
    %c0_43 = arith.constant 0 : index
    %c0_44 = arith.constant 0 : index
    %c0_45 = arith.constant 0 : index
    %97 = vector.load %arg11[%c0_43, %c0_44, %c0_45] : memref<4x8x32xbf16, #tpu.memory_space<vmem>>, vector<1x8x32xbf16>
    %98 = vector.shape_cast %97 : vector<1x8x32xbf16> to vector<8x32xbf16>
    %cst_46 = arith.constant dense<0.000000e+00> : vector<8x32xf32>
    %99 = tpu.matmul %96, %98, %cst_46 {dimension_numbers = #tpu.dot_dimension_numbers<[1], [0], [0], [1], [0, 0, 1, 1], [], []>} : vector<8x8xbf16>, vector<8x32xbf16>, vector<8x32xf32> -> vector<8x32xf32>
    %100 = arith.addf %77, %99 : vector<8x32xf32>
    %101 = vector.extract_strided_slice %72 {offsets = [0, 8], sizes = [8, 8], strides = [1, 1]} : vector<8x32xbf16> to vector<8x8xbf16>
    %102 = vector.extract_strided_slice %73 {offsets = [0, 8], sizes = [8, 8], strides = [1, 1]} : vector<8x32xbf16> to vector<8x8xbf16>
    %cst_47 = arith.constant dense<0.000000e+00> : vector<8x8xf32>
    %103 = tpu.matmul %101, %102, %cst_47 {dimension_numbers = #tpu.dot_dimension_numbers<[1], [1], [0], [0], [0, 0, 1, 0], [], []>} : vector<8x8xbf16>, vector<8x8xbf16>, vector<8x8xf32> -> vector<8x8xf32>
    %cst_48 = arith.constant 0.353553385 : f32
    %104 = vector.broadcast %cst_48 : f32 to vector<8x8xf32>
    %105 = arith.mulf %103, %104 : vector<8x8xf32>
    %cst_49 = arith.constant dense<0xFF800000> : vector<8xf32>
    %106 = vector.multi_reduction <maximumf>, %105, %cst_49 [1] : vector<8x8xf32> to vector<8xf32>
    %107 = vector.shape_cast %106 : vector<8xf32> to vector<8x1xf32>
    %108 = vector.broadcast %107 : vector<8x1xf32> to vector<8x8xf32>
    %109 = arith.subf %105, %108 : vector<8x8xf32>
    %110 = math.exp %109 : vector<8x8xf32>
    %cst_50 = arith.constant dense<0.000000e+00> : vector<8xf32>
    %111 = vector.multi_reduction <add>, %110, %cst_50 [1] : vector<8x8xf32> to vector<8xf32>
    %112 = vector.shape_cast %111 : vector<8xf32> to vector<8x1xf32>
    %113 = tpu.reciprocal %112 {approx = true} : vector<8x1xf32> -> vector<8x1xf32>
    %114 = vector.broadcast %113 : vector<8x1xf32> to vector<8x8xf32>
    %115 = arith.mulf %110, %114 : vector<8x8xf32>
    %116 = arith.truncf %115 : vector<8x8xf32> to vector<8x8xbf16>
    %117 = vector.extract_strided_slice %74 {offsets = [0, 8], sizes = [8, 8], strides = [1, 1]} : vector<8x32xbf16> to vector<8x8xbf16>
    %cst_51 = arith.constant dense<0.000000e+00> : vector<8x8xf32>
    %118 = tpu.matmul %116, %117, %cst_51 {dimension_numbers = #tpu.dot_dimension_numbers<[1], [0], [0], [1], [0, 0, 1, 1], [], []>} : vector<8x8xbf16>, vector<8x8xbf16>, vector<8x8xf32> -> vector<8x8xf32>
    %119 = arith.truncf %118 : vector<8x8xf32> to vector<8x8xbf16>
    %c1 = arith.constant 1 : index
    %c0_52 = arith.constant 0 : index
    %c0_53 = arith.constant 0 : index
    %120 = vector.load %arg11[%c1, %c0_52, %c0_53] : memref<4x8x32xbf16, #tpu.memory_space<vmem>>, vector<1x8x32xbf16>
    %121 = vector.shape_cast %120 : vector<1x8x32xbf16> to vector<8x32xbf16>
    %cst_54 = arith.constant dense<0.000000e+00> : vector<8x32xf32>
    %122 = tpu.matmul %119, %121, %cst_54 {dimension_numbers = #tpu.dot_dimension_numbers<[1], [0], [0], [1], [0, 0, 1, 1], [], []>} : vector<8x8xbf16>, vector<8x32xbf16>, vector<8x32xf32> -> vector<8x32xf32>
    %123 = arith.addf %100, %122 : vector<8x32xf32>
    %124 = vector.extract_strided_slice %72 {offsets = [0, 16], sizes = [8, 8], strides = [1, 1]} : vector<8x32xbf16> to vector<8x8xbf16>
    %125 = vector.extract_strided_slice %73 {offsets = [0, 16], sizes = [8, 8], strides = [1, 1]} : vector<8x32xbf16> to vector<8x8xbf16>
    %cst_55 = arith.constant dense<0.000000e+00> : vector<8x8xf32>
    %126 = tpu.matmul %124, %125, %cst_55 {dimension_numbers = #tpu.dot_dimension_numbers<[1], [1], [0], [0], [0, 0, 1, 0], [], []>} : vector<8x8xbf16>, vector<8x8xbf16>, vector<8x8xf32> -> vector<8x8xf32>
    %cst_56 = arith.constant 0.353553385 : f32
    %127 = vector.broadcast %cst_56 : f32 to vector<8x8xf32>
    %128 = arith.mulf %126, %127 : vector<8x8xf32>
    %cst_57 = arith.constant dense<0xFF800000> : vector<8xf32>
    %129 = vector.multi_reduction <maximumf>, %128, %cst_57 [1] : vector<8x8xf32> to vector<8xf32>
    %130 = vector.shape_cast %129 : vector<8xf32> to vector<8x1xf32>
    %131 = vector.broadcast %130 : vector<8x1xf32> to vector<8x8xf32>
    %132 = arith.subf %128, %131 : vector<8x8xf32>
    %133 = math.exp %132 : vector<8x8xf32>
    %cst_58 = arith.constant dense<0.000000e+00> : vector<8xf32>
    %134 = vector.multi_reduction <add>, %133, %cst_58 [1] : vector<8x8xf32> to vector<8xf32>
    %135 = vector.shape_cast %134 : vector<8xf32> to vector<8x1xf32>
    %136 = tpu.reciprocal %135 {approx = true} : vector<8x1xf32> -> vector<8x1xf32>
    %137 = vector.broadcast %136 : vector<8x1xf32> to vector<8x8xf32>
    %138 = arith.mulf %133, %137 : vector<8x8xf32>
    %139 = arith.truncf %138 : vector<8x8xf32> to vector<8x8xbf16>
    %140 = vector.extract_strided_slice %74 {offsets = [0, 16], sizes = [8, 8], strides = [1, 1]} : vector<8x32xbf16> to vector<8x8xbf16>
    %cst_59 = arith.constant dense<0.000000e+00> : vector<8x8xf32>
    %141 = tpu.matmul %139, %140, %cst_59 {dimension_numbers = #tpu.dot_dimension_numbers<[1], [0], [0], [1], [0, 0, 1, 1], [], []>} : vector<8x8xbf16>, vector<8x8xbf16>, vector<8x8xf32> -> vector<8x8xf32>
    %142 = arith.truncf %141 : vector<8x8xf32> to vector<8x8xbf16>
    %c2 = arith.constant 2 : index
    %c0_60 = arith.constant 0 : index
    %c0_61 = arith.constant 0 : index
    %143 = vector.load %arg11[%c2, %c0_60, %c0_61] : memref<4x8x32xbf16, #tpu.memory_space<vmem>>, vector<1x8x32xbf16>
    %144 = vector.shape_cast %143 : vector<1x8x32xbf16> to vector<8x32xbf16>
    %cst_62 = arith.constant dense<0.000000e+00> : vector<8x32xf32>
    %145 = tpu.matmul %142, %144, %cst_62 {dimension_numbers = #tpu.dot_dimension_numbers<[1], [0], [0], [1], [0, 0, 1, 1], [], []>} : vector<8x8xbf16>, vector<8x32xbf16>, vector<8x32xf32> -> vector<8x32xf32>
    %146 = arith.addf %123, %145 : vector<8x32xf32>
    %147 = vector.extract_strided_slice %72 {offsets = [0, 24], sizes = [8, 8], strides = [1, 1]} : vector<8x32xbf16> to vector<8x8xbf16>
    %148 = vector.extract_strided_slice %73 {offsets = [0, 24], sizes = [8, 8], strides = [1, 1]} : vector<8x32xbf16> to vector<8x8xbf16>
    %cst_63 = arith.constant dense<0.000000e+00> : vector<8x8xf32>
    %149 = tpu.matmul %147, %148, %cst_63 {dimension_numbers = #tpu.dot_dimension_numbers<[1], [1], [0], [0], [0, 0, 1, 0], [], []>} : vector<8x8xbf16>, vector<8x8xbf16>, vector<8x8xf32> -> vector<8x8xf32>
    %cst_64 = arith.constant 0.353553385 : f32
    %150 = vector.broadcast %cst_64 : f32 to vector<8x8xf32>
    %151 = arith.mulf %149, %150 : vector<8x8xf32>
    %cst_65 = arith.constant dense<0xFF800000> : vector<8xf32>
    %152 = vector.multi_reduction <maximumf>, %151, %cst_65 [1] : vector<8x8xf32> to vector<8xf32>
    %153 = vector.shape_cast %152 : vector<8xf32> to vector<8x1xf32>
    %154 = vector.broadcast %153 : vector<8x1xf32> to vector<8x8xf32>
    %155 = arith.subf %151, %154 : vector<8x8xf32>
    %156 = math.exp %155 : vector<8x8xf32>
    %cst_66 = arith.constant dense<0.000000e+00> : vector<8xf32>
    %157 = vector.multi_reduction <add>, %156, %cst_66 [1] : vector<8x8xf32> to vector<8xf32>
    %158 = vector.shape_cast %157 : vector<8xf32> to vector<8x1xf32>
    %159 = tpu.reciprocal %158 {approx = true} : vector<8x1xf32> -> vector<8x1xf32>
    %160 = vector.broadcast %159 : vector<8x1xf32> to vector<8x8xf32>
    %161 = arith.mulf %156, %160 : vector<8x8xf32>
    %162 = arith.truncf %161 : vector<8x8xf32> to vector<8x8xbf16>
    %163 = vector.extract_strided_slice %74 {offsets = [0, 24], sizes = [8, 8], strides = [1, 1]} : vector<8x32xbf16> to vector<8x8xbf16>
    %cst_67 = arith.constant dense<0.000000e+00> : vector<8x8xf32>
    %164 = tpu.matmul %162, %163, %cst_67 {dimension_numbers = #tpu.dot_dimension_numbers<[1], [0], [0], [1], [0, 0, 1, 1], [], []>} : vector<8x8xbf16>, vector<8x8xbf16>, vector<8x8xf32> -> vector<8x8xf32>
    %165 = arith.truncf %164 : vector<8x8xf32> to vector<8x8xbf16>
    %c3 = arith.constant 3 : index
    %c0_68 = arith.constant 0 : index
    %c0_69 = arith.constant 0 : index
    %166 = vector.load %arg11[%c3, %c0_68, %c0_69] : memref<4x8x32xbf16, #tpu.memory_space<vmem>>, vector<1x8x32xbf16>
    %167 = vector.shape_cast %166 : vector<1x8x32xbf16> to vector<8x32xbf16>
    %cst_70 = arith.constant dense<0.000000e+00> : vector<8x32xf32>
    %168 = tpu.matmul %165, %167, %cst_70 {dimension_numbers = #tpu.dot_dimension_numbers<[1], [0], [0], [1], [0, 0, 1, 1], [], []>} : vector<8x8xbf16>, vector<8x32xbf16>, vector<8x32xf32> -> vector<8x32xf32>
    %169 = arith.addf %146, %168 : vector<8x32xf32>
    %170 = arith.addf %31, %169 : vector<8x32xf32>
    %c0_71 = arith.constant 0 : index
    %c0_72 = arith.constant 0 : index
    %171 = vector.load %arg13[%c0_71, %c0_72] : memref<1x32xf32, #tpu.memory_space<vmem>>, vector<1x32xf32>
    %c0_73 = arith.constant 0 : index
    %c0_74 = arith.constant 0 : index
    %172 = vector.load %arg14[%c0_73, %c0_74] : memref<1x32xf32, #tpu.memory_space<vmem>>, vector<1x32xf32>
    %cst_75 = arith.constant dense<0.000000e+00> : vector<8xf32>
    %173 = vector.multi_reduction <add>, %170, %cst_75 [1] : vector<8x32xf32> to vector<8xf32>
    %174 = vector.shape_cast %173 : vector<8xf32> to vector<8x1xf32>
    %cst_76 = arith.constant 3.200000e+01 : f32
    %175 = vector.broadcast %cst_76 : f32 to vector<8x1xf32>
    %176 = arith.divf %174, %175 : vector<8x1xf32>
    %177 = vector.broadcast %176 : vector<8x1xf32> to vector<8x32xf32>
    %178 = arith.subf %170, %177 : vector<8x32xf32>
    %179 = arith.mulf %178, %178 : vector<8x32xf32>
    %cst_77 = arith.constant dense<0.000000e+00> : vector<8xf32>
    %180 = vector.multi_reduction <add>, %179, %cst_77 [1] : vector<8x32xf32> to vector<8xf32>
    %181 = vector.shape_cast %180 : vector<8xf32> to vector<8x1xf32>
    %cst_78 = arith.constant 3.200000e+01 : f32
    %182 = vector.broadcast %cst_78 : f32 to vector<8x1xf32>
    %183 = arith.divf %181, %182 : vector<8x1xf32>
    %184 = vector.broadcast %176 : vector<8x1xf32> to vector<8x32xf32>
    %185 = arith.subf %170, %184 : vector<8x32xf32>
    %cst_79 = arith.constant 9.99999974E-6 : f32
    %186 = vector.broadcast %cst_79 : f32 to vector<8x1xf32>
    %187 = arith.addf %183, %186 : vector<8x1xf32>
    %188 = math.rsqrt %187 : vector<8x1xf32>
    %189 = vector.broadcast %188 : vector<8x1xf32> to vector<8x32xf32>
    %190 = arith.mulf %185, %189 : vector<8x32xf32>
    %191 = vector.broadcast %171 : vector<1x32xf32> to vector<8x32xf32>
    %192 = arith.mulf %190, %191 : vector<8x32xf32>
    %193 = vector.broadcast %172 : vector<1x32xf32> to vector<8x32xf32>
    %194 = arith.addf %192, %193 : vector<8x32xf32>
    %195 = arith.truncf %194 : vector<8x32xf32> to vector<8x32xbf16>
    %c0_80 = arith.constant 0 : index
    %c0_81 = arith.constant 0 : index
    %196 = vector.load %arg15[%c0_80, %c0_81] : memref<32x64xbf16, #tpu.memory_space<vmem>>, vector<32x64xbf16>
    %cst_82 = arith.constant dense<0.000000e+00> : vector<8x64xf32>
    %197 = tpu.matmul %195, %196, %cst_82 {dimension_numbers = #tpu.dot_dimension_numbers<[1], [0], [0], [1], [0, 0, 1, 1], [], []>} : vector<8x32xbf16>, vector<32x64xbf16>, vector<8x64xf32> -> vector<8x64xf32>
    %c0_83 = arith.constant 0 : index
    %c0_84 = arith.constant 0 : index
    %198 = vector.load %arg16[%c0_83, %c0_84] : memref<1x64xf32, #tpu.memory_space<vmem>>, vector<1x64xf32>
    %199 = vector.broadcast %198 : vector<1x64xf32> to vector<8x64xf32>
    %200 = arith.addf %197, %199 : vector<8x64xf32>
    %cst_85 = arith.constant 5.000000e-01 : f32
    %201 = vector.broadcast %cst_85 : f32 to vector<8x64xf32>
    %202 = arith.mulf %201, %200 : vector<8x64xf32>
    %cst_86 = arith.constant 0.707106769 : f32
    %203 = vector.broadcast %cst_86 : f32 to vector<8x64xf32>
    %204 = arith.mulf %200, %203 : vector<8x64xf32>
    %205 = math.erf %204 : vector<8x64xf32>
    %cst_87 = arith.constant 1.000000e+00 : f32
    %206 = vector.broadcast %cst_87 : f32 to vector<8x64xf32>
    %207 = arith.addf %206, %205 : vector<8x64xf32>
    %208 = arith.mulf %202, %207 : vector<8x64xf32>
    %209 = arith.truncf %208 : vector<8x64xf32> to vector<8x64xbf16>
    %c0_88 = arith.constant 0 : index
    %c0_89 = arith.constant 0 : index
    %210 = vector.load %arg17[%c0_88, %c0_89] : memref<64x32xbf16, #tpu.memory_space<vmem>>, vector<64x32xbf16>
    %cst_90 = arith.constant dense<0.000000e+00> : vector<8x32xf32>
    %211 = tpu.matmul %209, %210, %cst_90 {dimension_numbers = #tpu.dot_dimension_numbers<[1], [0], [0], [1], [0, 0, 1, 1], [], []>} : vector<8x64xbf16>, vector<64x32xbf16>, vector<8x32xf32> -> vector<8x32xf32>
    %c0_91 = arith.constant 0 : index
    %c0_92 = arith.constant 0 : index
    %212 = vector.load %arg18[%c0_91, %c0_92] : memref<1x32xf32, #tpu.memory_space<vmem>>, vector<1x32xf32>
    %213 = vector.broadcast %212 : vector<1x32xf32> to vector<8x32xf32>
    %214 = arith.addf %211, %213 : vector<8x32xf32>
    %215 = arith.addf %170, %214 : vector<8x32xf32>
    %c0_93 = arith.constant 0 : index
    %c0_94 = arith.constant 0 : index
    %c0_95 = arith.constant 0 : index
    %216 = vector.load %arg19[%c0_93, %c0_94, %c0_95] : memref<1x8x32xf32, #tpu.memory_space<vmem>>, vector<1x8x32xf32>
    %217 = vector.shape_cast %216 : vector<1x8x32xf32> to vector<8x32xf32>
    %218 = vector.shape_cast %215 : vector<8x32xf32> to vector<1x8x32xf32>
    tpu.vector_store %arg19[%c0_93, %c0_94, %c0_95], %218 {strides = array<i32>} : memref<1x8x32xf32, #tpu.memory_space<vmem>>, vector<1x8x32xf32>,
    return
  }
  func.func @transform_0(%arg0: i32, %arg1: i32) -> (i32, i32, i32) {
    %c0_i32 = arith.constant 0 : i32
    %c0_i32_0 = arith.constant 0 : i32
    %c0_i32_1 = arith.constant 0 : i32
    return %arg0, %c0_i32, %c0_i32_0 : i32, i32, i32
  }
  func.func @transform_1(%arg0: i32, %arg1: i32) -> (i32, i32) {
    %c0_i32 = arith.constant 0 : i32
    %c0_i32_0 = arith.constant 0 : i32
    %c0_i32_1 = arith.constant 0 : i32
    return %c0_i32, %c0_i32_0 : i32, i32
  }
  func.func @transform_2(%arg0: i32, %arg1: i32) -> (i32, i32) {
    %c0_i32 = arith.constant 0 : i32
    %c0_i32_0 = arith.constant 0 : i32
    %c0_i32_1 = arith.constant 0 : i32
    return %c0_i32, %c0_i32_0 : i32, i32
  }
  func.func @transform_3(%arg0: i32, %arg1: i32) -> (i32, i32) {
    %c0_i32 = arith.constant 0 : i32
    %c0_i32_0 = arith.constant 0 : i32
    %c0_i32_1 = arith.constant 0 : i32
    return %c0_i32, %c0_i32_0 : i32, i32
  }
  func.func @transform_4(%arg0: i32, %arg1: i32) -> (i32, i32) {
    %c0_i32 = arith.constant 0 : i32
    %c0_i32_0 = arith.constant 0 : i32
    %c0_i32_1 = arith.constant 0 : i32
    return %c0_i32, %c0_i32_0 : i32, i32
  }
  func.func @transform_5(%arg0: i32, %arg1: i32) -> (i32, i32) {
    %c0_i32 = arith.constant 0 : i32
    %c0_i32_0 = arith.constant 0 : i32
    %c0_i32_1 = arith.constant 0 : i32
    return %c0_i32, %c0_i32_0 : i32, i32
  }
  func.func @transform_6(%arg0: i32, %arg1: i32) -> (i32, i32) {
    %c0_i32 = arith.constant 0 : i32
    %c0_i32_0 = arith.constant 0 : i32
    %c0_i32_1 = arith.constant 0 : i32
    return %c0_i32, %c0_i32_0 : i32, i32
  }
  func.func @transform_7(%arg0: i32, %arg1: i32) -> (i32, i32) {
    %c0_i32 = arith.constant 0 : i32
    %c0_i32_0 = arith.constant 0 : i32
    %c0_i32_1 = arith.constant 0 : i32
    return %c0_i32, %c0_i32_0 : i32, i32
  }
  func.func @transform_8(%arg0: i32, %arg1: i32) -> (i32, i32) {
    %c0_i32 = arith.constant 0 : i32
    %c0_i32_0 = arith.constant 0 : i32
    %c0_i32_1 = arith.constant 0 : i32
    return %c0_i32, %c0_i32_0 : i32, i32
  }
  func.func @transform_9(%arg0: i32, %arg1: i32) -> (i32, i32, i32) {
    %c0_i32 = arith.constant 0 : i32
    %c0_i32_0 = arith.constant 0 : i32
    %c0_i32_1 = arith.constant 0 : i32
    %c0_i32_2 = arith.constant 0 : i32
    return %c0_i32, %c0_i32_0, %c0_i32_1 : i32, i32, i32
  }
  func.func @transform_10(%arg0: i32, %arg1: i32) -> (i32, i32) {
    %c0_i32 = arith.constant 0 : i32
    %c0_i32_0 = arith.constant 0 : i32
    %c0_i32_1 = arith.constant 0 : i32
    return %c0_i32, %c0_i32_0 : i32, i32
  }
  func.func @transform_11(%arg0: i32, %arg1: i32) -> (i32, i32) {
    %c0_i32 = arith.constant 0 : i32
    %c0_i32_0 = arith.constant 0 : i32
    %c0_i32_1 = arith.constant 0 : i32
    return %c0_i32, %c0_i32_0 : i32, i32
  }
  func.func @transform_12(%arg0: i32, %arg1: i32) -> (i32, i32) {
    %c0_i32 = arith.constant 0 : i32
    %c0_i32_0 = arith.constant 0 : i32
    %c0_i32_1 = arith.constant 0 : i32
    return %c0_i32, %c0_i32_0 : i32, i32
  }
  func.func @transform_13(%arg0: i32, %arg1: i32) -> (i32, i32) {
    %c0_i32 = arith.constant 0 : i32
    %c0_i32_0 = arith.constant 0 : i32
    %c0_i32_1 = arith.constant 0 : i32
    return %c0_i32, %c0_i32_0 : i32, i32
  }
  func.func @transform_14(%arg0: i32, %arg1: i32) -> (i32, i32) {
    %c0_i32 = arith.constant 0 : i32
    %c0_i32_0 = arith.constant 0 : i32
    %c0_i32_1 = arith.constant 0 : i32
    return %c0_i32, %c0_i32_0 : i32, i32
  }
  func.func @transform_15(%arg0: i32, %arg1: i32) -> (i32, i32) {
    %c0_i32 = arith.constant 0 : i32
    %c0_i32_0 = arith.constant 0 : i32
    %c0_i32_1 = arith.constant 0 : i32
    return %c0_i32, %c0_i32_0 : i32, i32
  }
  func.func @transform_16(%arg0: i32, %arg1: i32) -> (i32, i32) {
    %c0_i32 = arith.constant 0 : i32
    %c0_i32_0 = arith.constant 0 : i32
    %c0_i32_1 = arith.constant 0 : i32
    return %c0_i32, %c0_i32_0 : i32, i32
  }
  func.func @transform_17(%arg0: i32, %arg1: i32) -> (i32, i32, i32) {
    %c0_i32 = arith.constant 0 : i32
    %c0_i32_0 = arith.constant 0 : i32
    return %arg0, %arg1, %c0_i32 : i32, i32, i32
  }
}

module attributes {stable_mosaic.version = 11 : i64} {
  func.func @transformer_encoder_kernel(%arg0: i32, %arg1: i32, %arg2: memref<1x8x32xf32, #tpu.memory_space<vmem>>, %arg3: memref<1x32xf32, #tpu.memory_space<vmem>>, %arg4: memref<1x32xf32, #tpu.memory_space<vmem>>, %arg5: memref<32x32xbf16, #tpu.memory_space<vmem>>, %arg6: memref<1x32xf32, #tpu.memory_space<vmem>>, %arg7: memref<32x32xbf16, #tpu.memory_space<vmem>>, %arg8: memref<1x32xf32, #tpu.memory_space<vmem>>, %arg9: memref<32x32xbf16, #tpu.memory_space<vmem>>, %arg10: memref<1x32xf32, #tpu.memory_space<vmem>>, %arg11: memref<4x8x32xbf16, #tpu.memory_space<vmem>>, %arg12: memref<1x32xf32, #tpu.memory_space<vmem>>, %arg13: memref<1x32xf32, #tpu.memory_space<vmem>>, %arg14: memref<1x32xf32, #tpu.memory_space<vmem>>, %arg15: memref<32x64xbf16, #tpu.memory_space<vmem>>, %arg16: memref<1x64xf32, #tpu.memory_space<vmem>>, %arg17: memref<64x32xbf16, #tpu.memory_space<vmem>>, %arg18: memref<1x32xf32, #tpu.memory_space<vmem>>, %arg19: memref<1x8x32xf32, #tpu.memory_space<vmem>>) attributes {dimension_semantics = [#tpu.dimension_semantics<parallel>, #tpu.dimension_semantics<parallel>], iteration_bounds = array<i64: 2, 1>, scalar_prefetch = 0 : i64, scratch_operands = 0 : i64, tpu.core_type = #tpu.core_type<tc>, window_params = [{transform_indices = @transform_0, window_bounds = array<i64: 1, 8, 32>}, {pipeline_mode = #tpu.pipeline_mode<synchronous>, transform_indices = @transform_1, window_bounds = array<i64: 1, 32>}, {pipeline_mode = #tpu.pipeline_mode<synchronous>, transform_indices = @transform_2, window_bounds = array<i64: 1, 32>}, {pipeline_mode = #tpu.pipeline_mode<synchronous>, transform_indices = @transform_3, window_bounds = array<i64: 32, 32>}, {pipeline_mode = #tpu.pipeline_mode<synchronous>, transform_indices = @transform_4, window_bounds = array<i64: 1, 32>}, {pipeline_mode = #tpu.pipeline_mode<synchronous>, transform_indices = @transform_5, window_bounds = array<i64: 32, 32>}, {pipeline_mode = #tpu.pipeline_mode<synchronous>, transform_indices = @transform_6, window_bounds = array<i64: 1, 32>}, {pipeline_mode = #tpu.pipeline_mode<synchronous>, transform_indices = @transform_7, window_bounds = array<i64: 32, 32>}, {pipeline_mode = #tpu.pipeline_mode<synchronous>, transform_indices = @transform_8, window_bounds = array<i64: 1, 32>}, {pipeline_mode = #tpu.pipeline_mode<synchronous>, transform_indices = @transform_9, window_bounds = array<i64: 4, 8, 32>}, {pipeline_mode = #tpu.pipeline_mode<synchronous>, transform_indices = @transform_10, window_bounds = array<i64: 1, 32>}, {pipeline_mode = #tpu.pipeline_mode<synchronous>, transform_indices = @transform_11, window_bounds = array<i64: 1, 32>}, {pipeline_mode = #tpu.pipeline_mode<synchronous>, transform_indices = @transform_12, window_bounds = array<i64: 1, 32>}, {pipeline_mode = #tpu.pipeline_mode<synchronous>, transform_indices = @transform_13, window_bounds = array<i64: 32, 64>}, {pipeline_mode = #tpu.pipeline_mode<synchronous>, transform_indices = @transform_14, window_bounds = array<i64: 1, 64>}, {pipeline_mode = #tpu.pipeline_mode<synchronous>, transform_indices = @transform_15, window_bounds = array<i64: 64, 32>}, {pipeline_mode = #tpu.pipeline_mode<synchronous>, transform_indices = @transform_16, window_bounds = array<i64: 1, 32>}, {transform_indices = @transform_17, window_bounds = array<i64: 1, 8, 32>}]} {
    %c8_i32 = arith.constant 8 : i32
    %0 = arith.muli %arg1, %c8_i32 : i32
    %1 = tpu.assume_multiple %0, 8 : i32
    %c0 = arith.constant 0 : index
    %c0_0 = arith.constant 0 : index
    %c0_1 = arith.constant 0 : index
    %2 = vector.load %arg2[%c0, %c0_0, %c0_1] : memref<1x8x32xf32, #tpu.memory_space<vmem>>, vector<1x8x32xf32>
    %3 = vector.shape_cast %2 : vector<1x8x32xf32> to vector<8x32xf32>
    %c0_2 = arith.constant 0 : index
    %c0_3 = arith.constant 0 : index
    %4 = vector.load %arg3[%c0_2, %c0_3] : memref<1x32xf32, #tpu.memory_space<vmem>>, vector<1x32xf32>
    %c0_4 = arith.constant 0 : index
    %c0_5 = arith.constant 0 : index
    %5 = vector.load %arg4[%c0_4, %c0_5] : memref<1x32xf32, #tpu.memory_space<vmem>>, vector<1x32xf32>
    %cst = arith.constant dense<0.000000e+00> : vector<8xf32>
    %6 = vector.multi_reduction <add>, %3, %cst [1] : vector<8x32xf32> to vector<8xf32>
    %7 = vector.shape_cast %6 : vector<8xf32> to vector<8x1xf32>
    %cst_6 = arith.constant 3.200000e+01 : f32
    %8 = vector.broadcast %cst_6 : f32 to vector<8x1xf32>
    %9 = arith.divf %7, %8 : vector<8x1xf32>
    %10 = vector.broadcast %9 : vector<8x1xf32> to vector<8x32xf32>
    %11 = arith.subf %3, %10 : vector<8x32xf32>
    %12 = arith.mulf %11, %11 : vector<8x32xf32>
    %cst_7 = arith.constant dense<0.000000e+00> : vector<8xf32>
    %13 = vector.multi_reduction <add>, %12, %cst_7 [1] : vector<8x32xf32> to vector<8xf32>
    %14 = vector.shape_cast %13 : vector<8xf32> to vector<8x1xf32>
    %cst_8 = arith.constant 3.200000e+01 : f32
    %15 = vector.broadcast %cst_8 : f32 to vector<8x1xf32>
    %16 = arith.divf %14, %15 : vector<8x1xf32>
    %17 = vector.broadcast %9 : vector<8x1xf32> to vector<8x32xf32>
    %18 = arith.subf %3, %17 : vector<8x32xf32>
    %cst_9 = arith.constant 9.99999974E-6 : f32
    %19 = vector.broadcast %cst_9 : f32 to vector<8x1xf32>
    %20 = arith.addf %16, %19 : vector<8x1xf32>
    %21 = math.rsqrt %20 : vector<8x1xf32>
    %22 = vector.broadcast %21 : vector<8x1xf32> to vector<8x32xf32>
    %23 = arith.mulf %18, %22 : vector<8x32xf32>
    %24 = vector.broadcast %4 : vector<1x32xf32> to vector<8x32xf32>
    %25 = arith.mulf %23, %24 : vector<8x32xf32>
    %26 = vector.broadcast %5 : vector<1x32xf32> to vector<8x32xf32>
    %27 = arith.addf %25, %26 : vector<8x32xf32>
    %28 = arith.truncf %27 : vector<8x32xf32> to vector<8x32xbf16>
    %c0_10 = arith.constant 0 : index
    %29 = arith.index_cast %1 : i32 to index
    %c0_11 = arith.constant 0 : index
    %30 = vector.load %arg2[%c0_10, %29, %c0_11] : memref<1x8x32xf32, #tpu.memory_space<vmem>>, vector<1x8x32xf32>
    %31 = vector.shape_cast %30 : vector<1x8x32xf32> to vector<8x32xf32>
    %c0_12 = arith.constant 0 : index
    %c0_13 = arith.constant 0 : index
    %32 = vector.load %arg3[%c0_12, %c0_13] : memref<1x32xf32, #tpu.memory_space<vmem>>, vector<1x32xf32>
    %c0_14 = arith.constant 0 : index
    %c0_15 = arith.constant 0 : index
    %33 = vector.load %arg4[%c0_14, %c0_15] : memref<1x32xf32, #tpu.memory_space<vmem>>, vector<1x32xf32>
    %cst_16 = arith.constant dense<0.000000e+00> : vector<8xf32>
    %34 = vector.multi_reduction <add>, %31, %cst_16 [1] : vector<8x32xf32> to vector<8xf32>
    %35 = vector.shape_cast %34 : vector<8xf32> to vector<8x1xf32>
    %cst_17 = arith.constant 3.200000e+01 : f32
    %36 = vector.broadcast %cst_17 : f32 to vector<8x1xf32>
    %37 = arith.divf %35, %36 : vector<8x1xf32>
    %38 = vector.broadcast %37 : vector<8x1xf32> to vector<8x32xf32>
    %39 = arith.subf %31, %38 : vector<8x32xf32>
    %40 = arith.mulf %39, %39 : vector<8x32xf32>
    %cst_18 = arith.constant dense<0.000000e+00> : vector<8xf32>
    %41 = vector.multi_reduction <add>, %40, %cst_18 [1] : vector<8x32xf32> to vector<8xf32>
    %42 = vector.shape_cast %41 : vector<8xf32> to vector<8x1xf32>
    %cst_19 = arith.constant 3.200000e+01 : f32
    %43 = vector.broadcast %cst_19 : f32 to vector<8x1xf32>
    %44 = arith.divf %42, %43 : vector<8x1xf32>
    %45 = vector.broadcast %37 : vector<8x1xf32> to vector<8x32xf32>
    %46 = arith.subf %31, %45 : vector<8x32xf32>
    %cst_20 = arith.constant 9.99999974E-6 : f32
    %47 = vector.broadcast %cst_20 : f32 to vector<8x1xf32>
    %48 = arith.addf %44, %47 : vector<8x1xf32>
    %49 = math.rsqrt %48 : vector<8x1xf32>
    %50 = vector.broadcast %49 : vector<8x1xf32> to vector<8x32xf32>
    %51 = arith.mulf %46, %50 : vector<8x32xf32>
    %52 = vector.broadcast %32 : vector<1x32xf32> to vector<8x32xf32>
    %53 = arith.mulf %51, %52 : vector<8x32xf32>
    %54 = vector.broadcast %33 : vector<1x32xf32> to vector<8x32xf32>
    %55 = arith.addf %53, %54 : vector<8x32xf32>
    %56 = arith.truncf %55 : vector<8x32xf32> to vector<8x32xbf16>
    %c0_21 = arith.constant 0 : index
    %c0_22 = arith.constant 0 : index
    %57 = vector.load %arg5[%c0_21, %c0_22] : memref<32x32xbf16, #tpu.memory_space<vmem>>, vector<32x32xbf16>
    %cst_23 = arith.constant dense<0.000000e+00> : vector<8x32xf32>
    %58 = tpu.matmul %56, %57, %cst_23 {dimension_numbers = #tpu.dot_dimension_numbers<[1], [0], [0], [1], [0, 0, 1, 1], [], []>} : vector<8x32xbf16>, vector<32x32xbf16>, vector<8x32xf32> -> vector<8x32xf32>
    %c0_24 = arith.constant 0 : index
    %c0_25 = arith.constant 0 : index
    %59 = vector.load %arg6[%c0_24, %c0_25] : memref<1x32xf32, #tpu.memory_space<vmem>>, vector<1x32xf32>
    %60 = vector.broadcast %59 : vector<1x32xf32> to vector<8x32xf32>
    %61 = arith.addf %58, %60 : vector<8x32xf32>
    %c0_26 = arith.constant 0 : index
    %c0_27 = arith.constant 0 : index
    %62 = vector.load %arg7[%c0_26, %c0_27] : memref<32x32xbf16, #tpu.memory_space<vmem>>, vector<32x32xbf16>
    %cst_28 = arith.constant dense<0.000000e+00> : vector<8x32xf32>
    %63 = tpu.matmul %28, %62, %cst_28 {dimension_numbers = #tpu.dot_dimension_numbers<[1], [0], [0], [1], [0, 0, 1, 1], [], []>} : vector<8x32xbf16>, vector<32x32xbf16>, vector<8x32xf32> -> vector<8x32xf32>
    %c0_29 = arith.constant 0 : index
    %c0_30 = arith.constant 0 : index
    %64 = vector.load %arg8[%c0_29, %c0_30] : memref<1x32xf32, #tpu.memory_space<vmem>>, vector<1x32xf32>
    %65 = vector.broadcast %64 : vector<1x32xf32> to vector<8x32xf32>
    %66 = arith.addf %63, %65 : vector<8x32xf32>
    %c0_31 = arith.constant 0 : index
    %c0_32 = arith.constant 0 : index
    %67 = vector.load %arg9[%c0_31, %c0_32] : memref<32x32xbf16, #tpu.memory_space<vmem>>, vector<32x32xbf16>
    %cst_33 = arith.constant dense<0.000000e+00> : vector<8x32xf32>
    %68 = tpu.matmul %28, %67, %cst_33 {dimension_numbers = #tpu.dot_dimension_numbers<[1], [0], [0], [1], [0, 0, 1, 1], [], []>} : vector<8x32xbf16>, vector<32x32xbf16>, vector<8x32xf32> -> vector<8x32xf32>
    %c0_34 = arith.constant 0 : index
    %c0_35 = arith.constant 0 : index
    %69 = vector.load %arg10[%c0_34, %c0_35] : memref<1x32xf32, #tpu.memory_space<vmem>>, vector<1x32xf32>
    %70 = vector.broadcast %69 : vector<1x32xf32> to vector<8x32xf32>
    %71 = arith.addf %68, %70 : vector<8x32xf32>
    %72 = arith.truncf %61 : vector<8x32xf32> to vector<8x32xbf16>
    %73 = arith.truncf %66 : vector<8x32xf32> to vector<8x32xbf16>
    %74 = arith.truncf %71 : vector<8x32xf32> to vector<8x32xbf16>
    %c0_36 = arith.constant 0 : index
    %c0_37 = arith.constant 0 : index
    %75 = vector.load %arg12[%c0_36, %c0_37] : memref<1x32xf32, #tpu.memory_space<vmem>>, vector<1x32xf32>
    %76 = vector.shape_cast %75 : vector<1x32xf32> to vector<1x32xf32>
    %77 = vector.broadcast %76 : vector<1x32xf32> to vector<8x32xf32>
    %78 = vector.extract_strided_slice %72 {offsets = [0, 0], sizes = [8, 8], strides = [1, 1]} : vector<8x32xbf16> to vector<8x8xbf16>
    %79 = vector.extract_strided_slice %73 {offsets = [0, 0], sizes = [8, 8], strides = [1, 1]} : vector<8x32xbf16> to vector<8x8xbf16>
    %cst_38 = arith.constant dense<0.000000e+00> : vector<8x8xf32>
    %80 = tpu.matmul %78, %79, %cst_38 {dimension_numbers = #tpu.dot_dimension_numbers<[1], [1], [0], [0], [0, 0, 1, 0], [], []>} : vector<8x8xbf16>, vector<8x8xbf16>, vector<8x8xf32> -> vector<8x8xf32>
    %cst_39 = arith.constant 0.353553385 : f32
    %81 = vector.broadcast %cst_39 : f32 to vector<8x8xf32>
    %82 = arith.mulf %80, %81 : vector<8x8xf32>
    %cst_40 = arith.constant dense<0xFF800000> : vector<8xf32>
    %83 = vector.multi_reduction <maximumf>, %82, %cst_40 [1] : vector<8x8xf32> to vector<8xf32>
    %84 = vector.shape_cast %83 : vector<8xf32> to vector<8x1xf32>
    %85 = vector.broadcast %84 : vector<8x1xf32> to vector<8x8xf32>
    %86 = arith.subf %82, %85 : vector<8x8xf32>
    %87 = math.exp %86 : vector<8x8xf32>
    %cst_41 = arith.constant dense<0.000000e+00> : vector<8xf32>
    %88 = vector.multi_reduction <add>, %87, %cst_41 [1] : vector<8x8xf32> to vector<8xf32>
    %89 = vector.shape_cast %88 : vector<8xf32> to vector<8x1xf32>
    %90 = tpu.reciprocal %89 {approx = true} : vector<8x1xf32> -> vector<8x1xf32>
    %91 = vector.broadcast %90 : vector<8x1xf32> to vector<8x8xf32>
    %92 = arith.mulf %87, %91 : vector<8x8xf32>
    %93 = arith.truncf %92 : vector<8x8xf32> to vector<8x8xbf16>
    %94 = vector.extract_strided_slice %74 {offsets = [0, 0], sizes = [8, 8], strides = [1, 1]} : vector<8x32xbf16> to vector<8x8xbf16>
    %cst_42 = arith.constant dense<0.000000e+00> : vector<8x8xf32>
    %95 = tpu.matmul %93, %94, %cst_42 {dimension_numbers = #tpu.dot_dimension_numbers<[1], [0], [0], [1], [0, 0, 1, 1], [], []>} : vector<8x8xbf16>, vector<8x8xbf16>, vector<8x8xf32> -> vector<8x8xf32>
    %96 = arith.truncf %95 : vector<8x8xf32> to vector<8x8xbf16>
    %c0_43 = arith.constant 0 : index
    %c0_44 = arith.constant 0 : index
    %c0_45 = arith.constant 0 : index
    %97 = vector.load %arg11[%c0_43, %c0_44, %c0_45] : memref<4x8x32xbf16, #tpu.memory_space<vmem>>, vector<1x8x32xbf16>
    %98 = vector.shape_cast %97 : vector<1x8x32xbf16> to vector<8x32xbf16>
    %cst_46 = arith.constant dense<0.000000e+00> : vector<8x32xf32>
    %99 = tpu.matmul %96, %98, %cst_46 {dimension_numbers = #tpu.dot_dimension_numbers<[1], [0], [0], [1], [0, 0, 1, 1], [], []>} : vector<8x8xbf16>, vector<8x32xbf16>, vector<8x32xf32> -> vector<8x32xf32>
    %100 = arith.addf %77, %99 : vector<8x32xf32>
    %101 = vector.extract_strided_slice %72 {offsets = [0, 8], sizes = [8, 8], strides = [1, 1]} : vector<8x32xbf16> to vector<8x8xbf16>
    %102 = vector.extract_strided_slice %73 {offsets = [0, 8], sizes = [8, 8], strides = [1, 1]} : vector<8x32xbf16> to vector<8x8xbf16>
    %cst_47 = arith.constant dense<0.000000e+00> : vector<8x8xf32>
    %103 = tpu.matmul %101, %102, %cst_47 {dimension_numbers = #tpu.dot_dimension_numbers<[1], [1], [0], [0], [0, 0, 1, 0], [], []>} : vector<8x8xbf16>, vector<8x8xbf16>, vector<8x8xf32> -> vector<8x8xf32>
    %cst_48 = arith.constant 0.353553385 : f32
    %104 = vector.broadcast %cst_48 : f32 to vector<8x8xf32>
    %105 = arith.mulf %103, %104 : vector<8x8xf32>
    %cst_49 = arith.constant dense<0xFF800000> : vector<8xf32>
    %106 = vector.multi_reduction <maximumf>, %105, %cst_49 [1] : vector<8x8xf32> to vector<8xf32>
    %107 = vector.shape_cast %106 : vector<8xf32> to vector<8x1xf32>
    %108 = vector.broadcast %107 : vector<8x1xf32> to vector<8x8xf32>
    %109 = arith.subf %105, %108 : vector<8x8xf32>
    %110 = math.exp %109 : vector<8x8xf32>
    %cst_50 = arith.constant dense<0.000000e+00> : vector<8xf32>
    %111 = vector.multi_reduction <add>, %110, %cst_50 [1] : vector<8x8xf32> to vector<8xf32>
    %112 = vector.shape_cast %111 : vector<8xf32> to vector<8x1xf32>
    %113 = tpu.reciprocal %112 {approx = true} : vector<8x1xf32> -> vector<8x1xf32>
    %114 = vector.broadcast %113 : vector<8x1xf32> to vector<8x8xf32>
    %115 = arith.mulf %110, %114 : vector<8x8xf32>
    %116 = arith.truncf %115 : vector<8x8xf32> to vector<8x8xbf16>
    %117 = vector.extract_strided_slice %74 {offsets = [0, 8], sizes = [8, 8], strides = [1, 1]} : vector<8x32xbf16> to vector<8x8xbf16>
    %cst_51 = arith.constant dense<0.000000e+00> : vector<8x8xf32>
    %118 = tpu.matmul %116, %117, %cst_51 {dimension_numbers = #tpu.dot_dimension_numbers<[1], [0], [0], [1], [0, 0, 1, 1], [], []>} : vector<8x8xbf16>, vector<8x8xbf16>, vector<8x8xf32> -> vector<8x8xf32>
    %119 = arith.truncf %118 : vector<8x8xf32> to vector<8x8xbf16>
    %c1 = arith.constant 1 : index
    %c0_52 = arith.constant 0 : index
    %c0_53 = arith.constant 0 : index
    %120 = vector.load %arg11[%c1, %c0_52, %c0_53] : memref<4x8x32xbf16, #tpu.memory_space<vmem>>, vector<1x8x32xbf16>
    %121 = vector.shape_cast %120 : vector<1x8x32xbf16> to vector<8x32xbf16>
    %cst_54 = arith.constant dense<0.000000e+00> : vector<8x32xf32>
    %122 = tpu.matmul %119, %121, %cst_54 {dimension_numbers = #tpu.dot_dimension_numbers<[1], [0], [0], [1], [0, 0, 1, 1], [], []>} : vector<8x8xbf16>, vector<8x32xbf16>, vector<8x32xf32> -> vector<8x32xf32>
    %123 = arith.addf %100, %122 : vector<8x32xf32>
    %124 = vector.extract_strided_slice %72 {offsets = [0, 16], sizes = [8, 8], strides = [1, 1]} : vector<8x32xbf16> to vector<8x8xbf16>
    %125 = vector.extract_strided_slice %73 {offsets = [0, 16], sizes = [8, 8], strides = [1, 1]} : vector<8x32xbf16> to vector<8x8xbf16>
    %cst_55 = arith.constant dense<0.000000e+00> : vector<8x8xf32>
    %126 = tpu.matmul %124, %125, %cst_55 {dimension_numbers = #tpu.dot_dimension_numbers<[1], [1], [0], [0], [0, 0, 1, 0], [], []>} : vector<8x8xbf16>, vector<8x8xbf16>, vector<8x8xf32> -> vector<8x8xf32>
    %cst_56 = arith.constant 0.353553385 : f32
    %127 = vector.broadcast %cst_56 : f32 to vector<8x8xf32>
    %128 = arith.mulf %126, %127 : vector<8x8xf32>
    %cst_57 = arith.constant dense<0xFF800000> : vector<8xf32>
    %129 = vector.multi_reduction <maximumf>, %128, %cst_57 [1] : vector<8x8xf32> to vector<8xf32>
    %130 = vector.shape_cast %129 : vector<8xf32> to vector<8x1xf32>
    %131 = vector.broadcast %130 : vector<8x1xf32> to vector<8x8xf32>
    %132 = arith.subf %128, %131 : vector<8x8xf32>
    %133 = math.exp %132 : vector<8x8xf32>
    %cst_58 = arith.constant dense<0.000000e+00> : vector<8xf32>
    %134 = vector.multi_reduction <add>, %133, %cst_58 [1] : vector<8x8xf32> to vector<8xf32>
    %135 = vector.shape_cast %134 : vector<8xf32> to vector<8x1xf32>
    %136 = tpu.reciprocal %135 {approx = true} : vector<8x1xf32> -> vector<8x1xf32>
    %137 = vector.broadcast %136 : vector<8x1xf32> to vector<8x8xf32>
    %138 = arith.mulf %133, %137 : vector<8x8xf32>
    %139 = arith.truncf %138 : vector<8x8xf32> to vector<8x8xbf16>
    %140 = vector.extract_strided_slice %74 {offsets = [0, 16], sizes = [8, 8], strides = [1, 1]} : vector<8x32xbf16> to vector<8x8xbf16>
    %cst_59 = arith.constant dense<0.000000e+00> : vector<8x8xf32>
    %141 = tpu.matmul %139, %140, %cst_59 {dimension_numbers = #tpu.dot_dimension_numbers<[1], [0], [0], [1], [0, 0, 1, 1], [], []>} : vector<8x8xbf16>, vector<8x8xbf16>, vector<8x8xf32> -> vector<8x8xf32>
    %142 = arith.truncf %141 : vector<8x8xf32> to vector<8x8xbf16>
    %c2 = arith.constant 2 : index
    %c0_60 = arith.constant 0 : index
    %c0_61 = arith.constant 0 : index
    %143 = vector.load %arg11[%c2, %c0_60, %c0_61] : memref<4x8x32xbf16, #tpu.memory_space<vmem>>, vector<1x8x32xbf16>
    %144 = vector.shape_cast %143 : vector<1x8x32xbf16> to vector<8x32xbf16>
    %cst_62 = arith.constant dense<0.000000e+00> : vector<8x32xf32>
    %145 = tpu.matmul %142, %144, %cst_62 {dimension_numbers = #tpu.dot_dimension_numbers<[1], [0], [0], [1], [0, 0, 1, 1], [], []>} : vector<8x8xbf16>, vector<8x32xbf16>, vector<8x32xf32> -> vector<8x32xf32>
    %146 = arith.addf %123, %145 : vector<8x32xf32>
    %147 = vector.extract_strided_slice %72 {offsets = [0, 24], sizes = [8, 8], strides = [1, 1]} : vector<8x32xbf16> to vector<8x8xbf16>
    %148 = vector.extract_strided_slice %73 {offsets = [0, 24], sizes = [8, 8], strides = [1, 1]} : vector<8x32xbf16> to vector<8x8xbf16>
    %cst_63 = arith.constant dense<0.000000e+00> : vector<8x8xf32>
    %149 = tpu.matmul %147, %148, %cst_63 {dimension_numbers = #tpu.dot_dimension_numbers<[1], [1], [0], [0], [0, 0, 1, 0], [], []>} : vector<8x8xbf16>, vector<8x8xbf16>, vector<8x8xf32> -> vector<8x8xf32>
    %cst_64 = arith.constant 0.353553385 : f32
    %150 = vector.broadcast %cst_64 : f32 to vector<8x8xf32>
    %151 = arith.mulf %149, %150 : vector<8x8xf32>
    %cst_65 = arith.constant dense<0xFF800000> : vector<8xf32>
    %152 = vector.multi_reduction <maximumf>, %151, %cst_65 [1] : vector<8x8xf32> to vector<8xf32>
    %153 = vector.shape_cast %152 : vector<8xf32> to vector<8x1xf32>
    %154 = vector.broadcast %153 : vector<8x1xf32> to vector<8x8xf32>
    %155 = arith.subf %151, %154 : vector<8x8xf32>
    %156 = math.exp %155 : vector<8x8xf32>
    %cst_66 = arith.constant dense<0.000000e+00> : vector<8xf32>
    %157 = vector.multi_reduction <add>, %156, %cst_66 [1] : vector<8x8xf32> to vector<8xf32>
    %158 = vector.shape_cast %157 : vector<8xf32> to vector<8x1xf32>
    %159 = tpu.reciprocal %158 {approx = true} : vector<8x1xf32> -> vector<8x1xf32>
    %160 = vector.broadcast %159 : vector<8x1xf32> to vector<8x8xf32>
    %161 = arith.mulf %156, %160 : vector<8x8xf32>
    %162 = arith.truncf %161 : vector<8x8xf32> to vector<8x8xbf16>
    %163 = vector.extract_strided_slice %74 {offsets = [0, 24], sizes = [8, 8], strides = [1, 1]} : vector<8x32xbf16> to vector<8x8xbf16>
    %cst_67 = arith.constant dense<0.000000e+00> : vector<8x8xf32>
    %164 = tpu.matmul %162, %163, %cst_67 {dimension_numbers = #tpu.dot_dimension_numbers<[1], [0], [0], [1], [0, 0, 1, 1], [], []>} : vector<8x8xbf16>, vector<8x8xbf16>, vector<8x8xf32> -> vector<8x8xf32>
    %165 = arith.truncf %164 : vector<8x8xf32> to vector<8x8xbf16>
    %c3 = arith.constant 3 : index
    %c0_68 = arith.constant 0 : index
    %c0_69 = arith.constant 0 : index
    %166 = vector.load %arg11[%c3, %c0_68, %c0_69] : memref<4x8x32xbf16, #tpu.memory_space<vmem>>, vector<1x8x32xbf16>
    %167 = vector.shape_cast %166 : vector<1x8x32xbf16> to vector<8x32xbf16>
    %cst_70 = arith.constant dense<0.000000e+00> : vector<8x32xf32>
    %168 = tpu.matmul %165, %167, %cst_70 {dimension_numbers = #tpu.dot_dimension_numbers<[1], [0], [0], [1], [0, 0, 1, 1], [], []>} : vector<8x8xbf16>, vector<8x32xbf16>, vector<8x32xf32> -> vector<8x32xf32>
    %169 = arith.addf %146, %168 : vector<8x32xf32>
    %170 = arith.addf %31, %169 : vector<8x32xf32>
    %c0_71 = arith.constant 0 : index
    %c0_72 = arith.constant 0 : index
    %171 = vector.load %arg13[%c0_71, %c0_72] : memref<1x32xf32, #tpu.memory_space<vmem>>, vector<1x32xf32>
    %c0_73 = arith.constant 0 : index
    %c0_74 = arith.constant 0 : index
    %172 = vector.load %arg14[%c0_73, %c0_74] : memref<1x32xf32, #tpu.memory_space<vmem>>, vector<1x32xf32>
    %cst_75 = arith.constant dense<0.000000e+00> : vector<8xf32>
    %173 = vector.multi_reduction <add>, %170, %cst_75 [1] : vector<8x32xf32> to vector<8xf32>
    %174 = vector.shape_cast %173 : vector<8xf32> to vector<8x1xf32>
    %cst_76 = arith.constant 3.200000e+01 : f32
    %175 = vector.broadcast %cst_76 : f32 to vector<8x1xf32>
    %176 = arith.divf %174, %175 : vector<8x1xf32>
    %177 = vector.broadcast %176 : vector<8x1xf32> to vector<8x32xf32>
    %178 = arith.subf %170, %177 : vector<8x32xf32>
    %179 = arith.mulf %178, %178 : vector<8x32xf32>
    %cst_77 = arith.constant dense<0.000000e+00> : vector<8xf32>
    %180 = vector.multi_reduction <add>, %179, %cst_77 [1] : vector<8x32xf32> to vector<8xf32>
    %181 = vector.shape_cast %180 : vector<8xf32> to vector<8x1xf32>
    %cst_78 = arith.constant 3.200000e+01 : f32
    %182 = vector.broadcast %cst_78 : f32 to vector<8x1xf32>
    %183 = arith.divf %181, %182 : vector<8x1xf32>
    %184 = vector.broadcast %176 : vector<8x1xf32> to vector<8x32xf32>
    %185 = arith.subf %170, %184 : vector<8x32xf32>
    %cst_79 = arith.constant 9.99999974E-6 : f32
    %186 = vector.broadcast %cst_79 : f32 to vector<8x1xf32>
    %187 = arith.addf %183, %186 : vector<8x1xf32>
    %188 = math.rsqrt %187 : vector<8x1xf32>
    %189 = vector.broadcast %188 : vector<8x1xf32> to vector<8x32xf32>
    %190 = arith.mulf %185, %189 : vector<8x32xf32>
    %191 = vector.broadcast %171 : vector<1x32xf32> to vector<8x32xf32>
    %192 = arith.mulf %190, %191 : vector<8x32xf32>
    %193 = vector.broadcast %172 : vector<1x32xf32> to vector<8x32xf32>
    %194 = arith.addf %192, %193 : vector<8x32xf32>
    %195 = arith.truncf %194 : vector<8x32xf32> to vector<8x32xbf16>
    %c0_80 = arith.constant 0 : index
    %c0_81 = arith.constant 0 : index
    %196 = vector.load %arg15[%c0_80, %c0_81] : memref<32x64xbf16, #tpu.memory_space<vmem>>, vector<32x64xbf16>
    %cst_82 = arith.constant dense<0.000000e+00> : vector<8x64xf32>
    %197 = tpu.matmul %195, %196, %cst_82 {dimension_numbers = #tpu.dot_dimension_numbers<[1], [0], [0], [1], [0, 0, 1, 1], [], []>} : vector<8x32xbf16>, vector<32x64xbf16>, vector<8x64xf32> -> vector<8x64xf32>
    %c0_83 = arith.constant 0 : index
    %c0_84 = arith.constant 0 : index
    %198 = vector.load %arg16[%c0_83, %c0_84] : memref<1x64xf32, #tpu.memory_space<vmem>>, vector<1x64xf32>
    %199 = vector.broadcast %198 : vector<1x64xf32> to vector<8x64xf32>
    %200 = arith.addf %197, %199 : vector<8x64xf32>
    %cst_85 = arith.constant 5.000000e-01 : f32
    %201 = vector.broadcast %cst_85 : f32 to vector<8x64xf32>
    %202 = arith.mulf %201, %200 : vector<8x64xf32>
    %cst_86 = arith.constant 0.707106769 : f32
    %203 = vector.broadcast %cst_86 : f32 to vector<8x64xf32>
    %204 = arith.mulf %200, %203 : vector<8x64xf32>
    %205 = math.erf %204 : vector<8x64xf32>
    %cst_87 = arith.constant 1.000000e+00 : f32
    %206 = vector.broadcast %cst_87 : f32 to vector<8x64xf32>
    %207 = arith.addf %206, %205 : vector<8x64xf32>
    %208 = arith.mulf %202, %207 : vector<8x64xf32>
    %209 = arith.truncf %208 : vector<8x64xf32> to vector<8x64xbf16>
    %c0_88 = arith.constant 0 : index
    %c0_89 = arith.constant 0 : index
    %210 = vector.load %arg17[%c0_88, %c0_89] : memref<64x32xbf16, #tpu.memory_space<vmem>>, vector<64x32xbf16>
    %cst_90 = arith.constant dense<0.000000e+00> : vector<8x32xf32>
    %211 = tpu.matmul %209, %210, %cst_90 {dimension_numbers = #tpu.dot_dimension_numbers<[1], [0], [0], [1], [0, 0, 1, 1], [], []>} : vector<8x64xbf16>, vector<64x32xbf16>, vector<8x32xf32> -> vector<8x32xf32>
    %c0_91 = arith.constant 0 : index
    %c0_92 = arith.constant 0 : index
    %212 = vector.load %arg18[%c0_91, %c0_92] : memref<1x32xf32, #tpu.memory_space<vmem>>, vector<1x32xf32>
    %213 = vector.broadcast %212 : vector<1x32xf32> to vector<8x32xf32>
    %214 = arith.addf %211, %213 : vector<8x32xf32>
    %215 = arith.addf %170, %214 : vector<8x32xf32>
    %c0_93 = arith.constant 0 : index
    %c0_94 = arith.constant 0 : index
    %c0_95 = arith.constant 0 : index
    %216 = vector.load %arg19[%c0_93, %c0_94, %c0_95] : memref<1x8x32xf32, #tpu.memory_space<vmem>>, vector<1x8x32xf32>
    %217 = vector.shape_cast %216 : vector<1x8x32xf32> to vector<8x32xf32>
    %218 = vector.shape_cast %215 : vector<8x32xf32> to vector<1x8x32xf32>
    tpu.vector_store %arg19[%c0_93, %c0_94, %c0_95], %218 {strides = array<i32>} : memref<1x8x32xf32, #tpu.memory_space<vmem>>, vector<1x8x32xf32>,
    return
  }
  func.func @transform_0(%arg0: i32, %arg1: i32) -> (i32, i32, i32) {
    %c0_i32 = arith.constant 0 : i32
    %c0_i32_0 = arith.constant 0 : i32
    %c0_i32_1 = arith.constant 0 : i32
    return %arg0, %c0_i32, %c0_i32_0 : i32, i32, i32
  }
  func.func @transform_1(%arg0: i32, %arg1: i32) -> (i32, i32) {
    %c0_i32 = arith.constant 0 : i32
    %c0_i32_0 = arith.constant 0 : i32
    %c0_i32_1 = arith.constant 0 : i32
    return %c0_i32, %c0_i32_0 : i32, i32
  }
  func.func @transform_2(%arg0: i32, %arg1: i32) -> (i32, i32) {
    %c0_i32 = arith.constant 0 : i32
    %c0_i32_0 = arith.constant 0 : i32
    %c0_i32_1 = arith.constant 0 : i32
    return %c0_i32, %c0_i32_0 : i32, i32
  }
  func.func @transform_3(%arg0: i32, %arg1: i32) -> (i32, i32) {
    %c0_i32 = arith.constant 0 : i32
    %c0_i32_0 = arith.constant 0 : i32
    %c0_i32_1 = arith.constant 0 : i32
    return %c0_i32, %c0_i32_0 : i32, i32
  }
  func.func @transform_4(%arg0: i32, %arg1: i32) -> (i32, i32) {
    %c0_i32 = arith.constant 0 : i32
    %c0_i32_0 = arith.constant 0 : i32
    %c0_i32_1 = arith.constant 0 : i32
    return %c0_i32, %c0_i32_0 : i32, i32
  }
  func.func @transform_5(%arg0: i32, %arg1: i32) -> (i32, i32) {
    %c0_i32 = arith.constant 0 : i32
    %c0_i32_0 = arith.constant 0 : i32
    %c0_i32_1 = arith.constant 0 : i32
    return %c0_i32, %c0_i32_0 : i32, i32
  }
  func.func @transform_6(%arg0: i32, %arg1: i32) -> (i32, i32) {
    %c0_i32 = arith.constant 0 : i32
    %c0_i32_0 = arith.constant 0 : i32
    %c0_i32_1 = arith.constant 0 : i32
    return %c0_i32, %c0_i32_0 : i32, i32
  }
  func.func @transform_7(%arg0: i32, %arg1: i32) -> (i32, i32) {
    %c0_i32 = arith.constant 0 : i32
    %c0_i32_0 = arith.constant 0 : i32
    %c0_i32_1 = arith.constant 0 : i32
    return %c0_i32, %c0_i32_0 : i32, i32
  }
  func.func @transform_8(%arg0: i32, %arg1: i32) -> (i32, i32) {
    %c0_i32 = arith.constant 0 : i32
    %c0_i32_0 = arith.constant 0 : i32
    %c0_i32_1 = arith.constant 0 : i32
    return %c0_i32, %c0_i32_0 : i32, i32
  }
  func.func @transform_9(%arg0: i32, %arg1: i32) -> (i32, i32, i32) {
    %c0_i32 = arith.constant 0 : i32
    %c0_i32_0 = arith.constant 0 : i32
    %c0_i32_1 = arith.constant 0 : i32
    %c0_i32_2 = arith.constant 0 : i32
    return %c0_i32, %c0_i32_0, %c0_i32_1 : i32, i32, i32
  }
  func.func @transform_10(%arg0: i32, %arg1: i32) -> (i32, i32) {
    %c0_i32 = arith.constant 0 : i32
    %c0_i32_0 = arith.constant 0 : i32
    %c0_i32_1 = arith.constant 0 : i32
    return %c0_i32, %c0_i32_0 : i32, i32
  }
  func.func @transform_11(%arg0: i32, %arg1: i32) -> (i32, i32) {
    %c0_i32 = arith.constant 0 : i32
    %c0_i32_0 = arith.constant 0 : i32
    %c0_i32_1 = arith.constant 0 : i32
    return %c0_i32, %c0_i32_0 : i32, i32
  }
  func.func @transform_12(%arg0: i32, %arg1: i32) -> (i32, i32) {
    %c0_i32 = arith.constant 0 : i32
    %c0_i32_0 = arith.constant 0 : i32
    %c0_i32_1 = arith.constant 0 : i32
    return %c0_i32, %c0_i32_0 : i32, i32
  }
  func.func @transform_13(%arg0: i32, %arg1: i32) -> (i32, i32) {
    %c0_i32 = arith.constant 0 : i32
    %c0_i32_0 = arith.constant 0 : i32
    %c0_i32_1 = arith.constant 0 : i32
    return %c0_i32, %c0_i32_0 : i32, i32
  }
  func.func @transform_14(%arg0: i32, %arg1: i32) -> (i32, i32) {
    %c0_i32 = arith.constant 0 : i32
    %c0_i32_0 = arith.constant 0 : i32
    %c0_i32_1 = arith.constant 0 : i32
    return %c0_i32, %c0_i32_0 : i32, i32
  }
  func.func @transform_15(%arg0: i32, %arg1: i32) -> (i32, i32) {
    %c0_i32 = arith.constant 0 : i32
    %c0_i32_0 = arith.constant 0 : i32
    %c0_i32_1 = arith.constant 0 : i32
    return %c0_i32, %c0_i32_0 : i32, i32
  }
  func.func @transform_16(%arg0: i32, %arg1: i32) -> (i32, i32) {
    %c0_i32 = arith.constant 0 : i32
    %c0_i32_0 = arith.constant 0 : i32
    %c0_i32_1 = arith.constant 0 : i32
    return %c0_i32, %c0_i32_0 : i32, i32
  }
  func.func @transform_17(%arg0: i32, %arg1: i32) -> (i32, i32, i32) {
    %c0_i32 = arith.constant 0 : i32
    %c0_i32_0 = arith.constant 0 : i32
    return %arg0, %arg1, %c0_i32 : i32, i32, i32
  }
}

</mosaic_0001>

<bundles_post_ra>
// kernel: tpu_custom_call.1
= control target key start
LH: loop header
LB: loop body
LE: loop exit
PB: predicated region body
PF: predicated region fallthrough
CT: control target
= control target key end

     0   :  { %s2248_s0 = inlined_call_operand.vmem [shape: f32[2,8,32], index: 0, kind: input, shape index: {}]   ;;  %s2249_s1 = inlined_call_operand.hbm [shape: f32[1,32], index: 1, kind: input, shape index: {}]   ;;  %s2250_s2 = inlined_call_operand.vmem [shape: f32[1,32], index: 2, kind: input, shape index: {}]   ;;  %s2251_s3 = inlined_call_operand.vmem [shape: bf16[32,32], index: 3, kind: input, shape index: {}]   ;;  %s2252_s4 = inlined_call_operand.vmem [shape: f32[1,32], index: 4, kind: input, shape index: {}]   ;;  %s2253_s5 = inlined_call_operand.vmem [shape: bf16[32,32], index: 5, kind: input, shape index: {}]   ;;  %s2254_s6 = inlined_call_operand.vmem [shape: f32[1,32], index: 6, kind: input, shape index: {}]   ;;  %s2255_s7 = inlined_call_operand.hbm [shape: bf16[32,32], index: 7, kind: input, shape index: {}]   ;;  %s2256_s8 = inlined_call_operand.vmem [shape: f32[1,32], index: 8, kind: input, shape index: {}]   ;;  %s2257_s9 = inlined_call_operand.hbm [shape: bf16[4,8,32], index: 9, kind: input, shape index: {}]   ;;  %s2258_s10 = inlined_call_operand.vmem [shape: f32[1,32], index: 10, kind: input, shape index: {}]   ;;  %s2259_s11 = inlined_call_operand.vmem [shape: f32[1,32], index: 11, kind: input, shape index: {}]   ;;  %s2260_s12 = inlined_call_operand.vmem [shape: f32[1,32], index: 12, kind: input, shape index: {}]   ;;  %s2261_s13 = inlined_call_operand.hbm [shape: bf16[32,64], index: 13, kind: input, shape index: {}]   ;;  %s2262_s14 = inlined_call_operand.vmem [shape: f32[1,64], index: 14, kind: input, shape index: {}]   ;;  %s2263_s15 = inlined_call_operand.vmem [shape: bf16[64,32], index: 15, kind: input, shape index: {}]   ;;  %s2264_s16 = inlined_call_operand.vmem [shape: f32[1,32], index: 16, kind: input, shape index: {}]   ;;  %s2265_s17 = inlined_call_operand.hbm [shape: f32[2,8,32], index: 17, kind: output, shape index: {}]  }
   0x1   :  { %2278 = sst [smem:[#allocation24_spill]] %s2248_s0 }
   0x2   :  { %2279 = sst [smem:[#allocation25_spill]] %s2249_s1 }
   0x3   :  { %2280 = sst [smem:[#allocation26_spill]] %s2255_s7 }
   0x4   :  { %2281 = sst [smem:[#allocation27_spill]] %s2262_s14 }
   0x5   :  { %2282 = sst [smem:[#allocation28_spill]] %s2263_s15 }
   0x6   :  { %2283 = sst [smem:[#allocation29_spill]] %s2264_s16 }
   0x7   :  { %2284 = sst [smem:[#allocation30_spill]] %s2265_s17 }
   0x8   :  { %22 = vsyncpa [#allocation3], 0 }
   0x9   :  { %23 = vsyncpa [#allocation6], 0 }
   0xa   :  { %24 = vsyncpa [#allocation9], 0 }
   0xb   :  { %25 = vsyncpa [#allocation4], 0 }
   0xc   :  { %27 = vsyncpa [#allocation4 + $0x1], 0  ;;  %s1975_s24 = smov 0   ;;  %s1977_s25 = smov 0  }
   0xd   :  { %s1979_s26 = smov 0   ;;  %s1981_s27 = smov 0  }
   0xe   :  { %s1983_s28 = smov 0   ;;  %s1985_s29 = smov 0  }
   0xf LB: > { %2285 = sst [smem:[#allocation15_spill]] %s1853_s24  ;;  %s1428_s0 = sadd.s32 4294967295, %s1873_s29   ;;  %s1873_s29 = sphi %s1985_s29, %s33_s29   ;;  %s1869_s28 = sphi %s1983_s28, %s2316_s28   ;;  %s1865_s27 = sphi %s1981_s27, %s2315_s27   ;;  %s1861_s26 = sphi %s1979_s26, %s2314_s26   ;;  %s1857_s25 = sphi %s1977_s25, %s2313_s25   ;;  %s1853_s24 = sphi %s1975_s24, %s2312_s24  }
  0x10   : > { %2286 = sst [smem:[#allocation16_spill]] %s1857_s25  ;;  %s1429_s30 = sadd.s32 4294967294, %s1873_s29  }
  0x11   : > { %2287 = sst [smem:[#allocation17_spill]] %s1861_s26  ;;  %s45_s18 = sadd.s32 1, %s1869_s28 }
  0x12   : > { %2288 = sst [smem:[#allocation18_spill]] %s1869_s28  ;;  %s416_s19 = sadd.s32 1, %s1861_s26 }
  0x13   : > { %2289 = sst [smem:[#allocation19_spill]] %s1873_s29  ;;  %p47_p0 = scmp.ge.s32.totalorder %s45_s18, 2 }
  0x14   : > { %p426_p1 = scmp.ne.s32.totalorder %s1861_s26, %s1857_s25  ;;  %p427_p2 = scmp.eq.s32.totalorder %s1428_s0, 1 }
  0x15   : > { %p432_p3 = scmp.ne.s32.totalorder %s1857_s25, %s1853_s24  ;;  %s2318_s18 = smov (%p47_p0, %s45_s18), 0 }
  0x16   : > { %2290 = sst [smem:[#allocation20_spill]] %s2318_s18  ;;  %p2015_p4 = por %p427_p2, %p426_p1 }
  0x17   : > { %p433_p5 = scmp.eq.s32.totalorder %s1429_s30, 1  ;;  %s411_s20 = ssub.s32 %s1869_s28, %s2318_s18 }
  0x18   : > { %s2291_s1 = scalar_select %p2015_p4, 1, 0 }
  0x19   : > { %p1430_p6 = scmp.ge.s32.totalorder %s1873_s29, 1  ;;  %p414_p7 = scmp.eq.s32.totalorder %s411_s20, 0 }
  0x1a   : > { %2292 = sst [smem:[#allocation21_spill]] %s2291_s1  ;;  %p2022_p8 = por %p433_p5, %p432_p3 }
  0x1b   : > { %p440_p9 = scmp.lt.s32.totalorder %s1873_s29, 3  ;;  %p2034_p11 = scmp.eq.s32.totalorder %s1428_s0, 0 }
  0x1c   : > { %s2293_s21 = scalar_select %p2022_p8, 1, 0 }
  0x1d   : > { %s2028_s22 = scalar_select %p414_p7, %s1861_s26, %s416_s19  }
  0x1e   : > { %2294 = sst [smem:[#allocation22_spill]] %s2293_s21  ;;  %p2030_p10 = pnand %p1430_p6, %p440_p9 }
  0x1f   : > { %2295 = sst [smem:[#allocation23_spill]] %s2028_s22  ;;  %s1875_s28 = smov [#allocation5]  }
  0x20   : > { %s2298_s7 = sld [smem:[#allocation26_spill]]  ;;  %p1543_p12 = pneg %p2030_p10 }
  0x21   : > { %s480_s19 = sshll.u32 %s1875_s28, 4  ;;  %s1876_s0 = smov 64   ;;  %s481_s19 = int_to_ptr.vmem [resolvable:$true] %s480_s19 }
  0x22   : > { %p2045_p13 = pnand %p2034_p11, %p1543_p12  ;;  %s1877_s26 = smov 4  }
  0x23   : > { %s1878_s28 = smov [#allocation2]   ;;  %s495_s16 = sshll.u32 %s2257_s9, 4  ;;  %s496_s16 = int_to_ptr.hbm [resolvable:$true] %s495_s16 }
  0x24   : > { %s454_s29 = sshll.u32 %s1878_s28, 4  ;;  %s1879_s25 = smov [#allocation7]   ;;  %s455_s29 = int_to_ptr.vmem [resolvable:$true] %s454_s29 }
  0x25   : > { %s497_s15 = sshll.u32 %s1879_s25, 4  ;;  %s498_s15 = int_to_ptr.vmem [resolvable:$true] %s497_s15 }
  0x26   : > { %s478_s20 = sshll.u32 %s2298_s7, 4  ;;  %s2300_s7 = sld [smem:[#allocation25_spill]]  ;;  %s479_s20 = int_to_ptr.hbm [resolvable:$true] %s478_s20 }
  0x27   : > { %1549 = dma.hbm_to_vmem [thread:$0]  (!%p2045_p13), %s479_s20, 256, %s481_s19, [#allocation6], %s1876_s0, %s1876_s0, %s1877_s26  }
  0x28   : > { %s518_s19 = sshll.u32 %s2261_s13, 4  ;;  %s519_s19 = int_to_ptr.hbm [resolvable:$true] %s518_s19 }
  0x29   : > { %1552 = dma.hbm_to_vmem [thread:$0]  (!%p2045_p13), %s496_s16, 256, %s498_s15, [#allocation6], %s1876_s0, %s1876_s0, %s1877_s26  }
  0x2b   : > { %552 = sbr.rel (%p2030_p10) target bundleno = 2343 (0x927), region = 88 }
  0x2c   : > { %s452_s21 = sshll.u32 %s2300_s7, 4  ;;  %s1880_s7 = smov [#allocation8]   ;;  %s453_s21 = int_to_ptr.hbm [resolvable:$true] %s452_s21 }
  0x2d   : > { %1546 = dma.hbm_to_vmem [thread:$0]  (!%p2045_p13), %s453_s21, 16, %s455_s29, [#allocation3]  }
  0x2e   : > { %s520_s18 = sshll.u32 %s1880_s7, 4  ;;  %s521_s18 = int_to_ptr.vmem [resolvable:$true] %s520_s18 }
  0x2f   : > { %1555 = dma.hbm_to_vmem [thread:$0]  (!%p2045_p13), %s519_s19, 256, %s521_s18, [#allocation9], %s1876_s0, %s1876_s0, %s1877_s26  }
  0x30   : > { %1836 = dma.done.wait (%p2034_p11), [#allocation3], 16  }
  0x31   : > { %1838 = vsyncadd (%p2034_p11), [#allocation3], 4294967280 }
  0x32   : > { %1840 = dma.done.wait (%p2034_p11), [#allocation6], 512  }
  0x33   : > { %1842 = vsyncadd (%p2034_p11), [#allocation6], 4294966784 }
  0x34   : > { %1844 = dma.done.wait (%p2034_p11), [#allocation9], 256  }
  0x35   : > { %1846 = vsyncadd (%p2034_p11), [#allocation9], 4294967040  ;;  %p619_p0 = scmp.lt.s32.totalorder %s1865_s27, 1  ;;  %s2301_s25 = sld [smem:[#allocation24_spill]]  ;;  %vm628_vm0 = vcmask 261120   ;;  %v1881_v2 = vmov 32.0  }
  0x36   : > { %1637 = vrcp.f32 %v1881_v2  ;;  %v1516_v19 = vld [vmem:[%s2253_s5 + $0x8] sm:$0xff]  ;;  %v1515_v21 = vld [vmem:[%s2253_s5] sm:$0xff]  ;;  %vm806_vm8 = vcmask 64512   ;;  %vm842_vm9 = vcmask 1043456   ;;  %s1882_s17 = smov 120   ;;  %s2302_s28 = sld [smem:[#allocation27_spill]] }
  0x37   : > { %s620_s14 = scalar_select %p619_p0, %s1865_s27, 1  ;;  %v1518_v20 = vld [vmem:[#allocation5 + $0x8] sm:$0xff]  ;;  %759 = vmatpush.bf16.msra.mxu1 %v1516_v19  ;;  %v1517_v22 = vld [vmem:[#allocation5] sm:$0xff]  ;;  %v1627_v39 = vld [vmem:[#allocation2] ss:$0 sm:$0xff] }
  0x38   : > { %792 = vmatpush.bf16.msra.mxu2 %v1518_v20  ;;  %v1514_v23 = vld [vmem:[%s2251_s3 + $0x8] sm:$0xff]  ;;  %v1513_v25 = vld [vmem:[%s2251_s3] sm:$0xff]  ;;  %s2303_s7 = sld [smem:[#allocation28_spill]]  ;;  %s1510_s1 = sshll.u32 %s1865_s27, 3 }
  0x39   : > { %s1442_s15 = sshll.u32 %s620_s14, 3  ;;  %723 = vmatpush.bf16.msra.mxu0 %v1514_v23  ;;  %v1628_v43 = vld [vmem:[%s2250_s2] ss:$0 sm:$0xff]  ;;  %s2305_s23 = sld [smem:[#allocation29_spill]] }
  0x3a   : > { %v1629_v55 = vld [vmem:[%s2254_s6] ss:$0 sm:$0xff] }
  0x3b   : > { %s622_s26 = scalar_lea.vmem %s2301_s25, %s1442_s15  ;;  %760 = vmatpush.bf16.msra.mxu1 %v1515_v21  ;;  %v1630_v59 = vld [vmem:[%s2256_s8] ss:$0 sm:$0xff]  ;;  %s1883_s25 = smov 112  }
  0x3c   : > { %v2085_v0 = vld [vmem:[%s622_s26] sm:$0xff]  ;;  %v1638_v3 = vpop.eup %1637  ;;  %793 = vmatpush.bf16.msra.mxu2 %v1517_v22  ;;  %s1884_s26 = smov 104  }
  0x3d   : > { %v629_v1 = vsel %vm628_vm0, %v2085_v0, 0.0  ;;  %v633_v4 = vmul.f32 32.0, %v1638_v3  ;;  %vm637_vm1 = vweird.f32 %v1638_v3  ;;  %724 = vmatpush.bf16.msra.mxu0 %v1513_v25  ;;  %v1631_v62 = vld [vmem:[%s2252_s4] ss:$0 sm:$0xff] }
  0x3e   : > { %630 = vadd.xlane.f32.xlu0 %v629_v1 }
  0x3f   : > { %v634_v5 = vsub.f32 1.0, %v633_v4 }
  0x41   : > { %v635_v6 = vmul.f32 %v1638_v3, %v634_v5 }
  0x43   : > { %v636_v7 = vadd.f32 %v1638_v3, %v635_v6 }
  0x45   : > { %v2089_v8 = vsel %vm637_vm1, %v1638_v3, %v636_v7 }
  0x46   : > { %670 = vadd.xlane.f32.xlu0 %v629_v1 }
  0xb1   : > { %v631_v9 = vpop.xlane.xlu0 %630 }
  0xb2   : > { %v639_v10 = vmul.f32 %v2089_v8, %v631_v9 }
  0xb4   : > { %v640_v11 = vsub.f32 %v2085_v0, %v639_v10 }
  0xb6   : > { %v641_v12 = vmul.f32 %v640_v11, %v640_v11 }
  0xb8   : > { %v642_v13 = vsel %vm628_vm0, %v641_v12, 0.0 }
  0xb9   : > { %643 = vadd.xlane.f32.xlu1 %v642_v13  ;;  %v671_v14 = vpop.xlane.xlu0 %670 }
  0xba   : > { %v672_v15 = vmul.f32 %v671_v14, %v2089_v8 }
  0xbc   : > { %v673_v16 = vsub.f32 %v2085_v0, %v672_v15 }
  0xbe   : > { %v674_v17 = vmul.f32 %v673_v16, %v673_v16 }
  0xc0   : > { %v675_v18 = vsel %vm628_vm0, %v674_v17, 0.0 }
  0xc1   : > { %676 = vadd.xlane.f32.xlu1 %v675_v18 }
 0x12c   : > { %v644_v24 = vpop.xlane.xlu1 %643 }
 0x12d   : > { %v645_v26 = vmul.f32 %v644_v24, %v2089_v8 }
 0x12f   : > { %v646_v27 = vadd.f32 1e-05, %v645_v26 }
 0x131   : > { %1639 = vrsqrt.f32 %v646_v27  ;;  %vm653_vm3 = vweird.f32 %v646_v27 }
 0x134   : > { %v677_v28 = vpop.xlane.xlu1 %676 }
 0x135   : > { %v678_v29 = vmul.f32 %v677_v28, %v2089_v8 }
 0x137   : > { %v1640_v30 = vpop.eup %1639  ;;  %v679_v31 = vadd.f32 1e-05, %v678_v29 }
 0x138   : > { %v648_v32 = vmul.f32 %v1640_v30, %v646_v27  ;;  %vm654_vm2 = vweird.f32 %v1640_v30 }
 0x139   : > { %1641 = vrsqrt.f32 %v679_v31  ;;  %vm655_vm4 = vmor %vm653_vm3, %vm654_vm2  ;;  %vm686_vm6 = vweird.f32 %v679_v31  ;;  %vm1281_vm2 = vcmask 523264  }
 0x13a   : > { %v649_v33 = vmul.f32 %v1640_v30, %v648_v32 }
 0x13c   : > { %v650_v34 = vmul.f32 0.5, %v649_v33 }
 0x13e   : > { %v651_v35 = vsub.f32 1.5, %v650_v34 }
 0x13f   : > { %v1642_v36 = vpop.eup %1641 }
 0x140   : > { %v652_v37 = vmul.f32 %v1640_v30, %v651_v35  ;;  %v681_v38 = vmul.f32 %v1642_v36, %v679_v31  ;;  %vm687_vm5 = vweird.f32 %v1642_v36 }
 0x141   : > { %vm688_vm7 = vmor %vm686_vm6, %vm687_vm5 }
 0x142   : > { %v656_v40 = vsel %vm655_vm4, %v1640_v30, %v652_v37  ;;  %v682_v41 = vmul.f32 %v1642_v36, %v681_v38 }
 0x143   : > { %v657_v42 = vmul.f32 %v656_v40, %v640_v11 }
 0x144   : > { %v683_v44 = vmul.f32 0.5, %v682_v41 }
 0x145   : > { %v661_v45 = vmul.f32 %v1627_v39, %v657_v42 }
 0x146   : > { %v684_v46 = vsub.f32 1.5, %v683_v44 }
 0x147   : > { %v665_v47 = vadd.f32 %v1628_v43, %v661_v45  ;;  %v949_v45 = vld [vmem:[#allocation7 + $0x4] sm:$0xf] }
 0x148   : > { %v685_v48 = vmul.f32 %v1642_v36, %v684_v46  ;;  %v954_v46 = vsel %vm842_vm9, %v949_v45, 0 }
 0x149   : > { %v666_v49 = vpack.c.bf16 %v665_v47, %v665_v47 }
 0x14a   : > { %v689_v50 = vsel %vm688_vm7, %v1642_v36, %v685_v48 }
 0x14b   : > { %1460 = vmatmul.msk.bf16.vlgmr.msra.gmra.mxu1 %vm628_vm0, %v666_v49  ;;  %1469 = vmatmul.msk.bf16.vlgmr.msra.gmra.mxu2 %vm628_vm0, %v666_v49  ;;  %v690_v51 = vmul.f32 %v689_v50, %v673_v16 }
 0x14d   : > { %v691_v52 = vmul.f32 %v1627_v39, %v690_v51 }
 0x14f   : > { %v692_v53 = vadd.f32 %v1628_v43, %v691_v52  ;;  %v860_v43 = vld [vmem:[#allocation7] sm:$0xf] }
 0x150   : > { %v865_v44 = vsel %vm842_vm9, %v860_v43, 0 }
 0x151   : > { %v693_v54 = vpack.c.bf16 %v692_v53, %v692_v53  ;;  %874 = vmatpush.bf16.msrb.mxu1 %v865_v44 }
 0x153   : > { %1451 = vmatmul.msk.bf16.vlgmr.msra.gmra.mxu0 %vm628_vm0, %v693_v54 }
 0x1c8   : > { %v762_v56 = vpop.f32.mrf.mxu1 }
 0x1c9   : > { %v763_v57 = vadd.f32 %v1629_v55, %v762_v56 }
 0x1cb   : > { %v800_v58 = vpack.c.bf16 %v763_v57, %v763_v57 }
 0x1cd   : > { %v887_v60 = vunpack.c.l.b16 %v800_v58  ;;  %v811_v61 = vsel %vm806_vm8, %v800_v58, 0 }
 0x1ce   : > { %v795_v63 = vpop.f32.mrf.mxu2  ;;  %820 = vmatpush.bf16.xpose.msra.mxu3 %v811_v61 }
 0x1cf   : > { %v888_v1 = vpack.c.b16 %v887_v60, %v887_v60  ;;  %v796_v2 = vadd.f32 %v1630_v59, %v795_v63 }
 0x1d0   : > { %v726_v3 = vpop.f32.mrf.mxu0  ;;  %v764_v4 = vpop.f32.mrf.mxu1 }
 0x1d1   : > { %v801_v5 = vpack.c.bf16 %v796_v2, %v796_v2  ;;  %v727_v6 = vadd.f32 %v1631_v62, %v726_v3  ;;  %889 = vrot.lane.b32.xlu2 %v888_v1, %s1882_s17 }
 0x1d3   : > { %v799_v7 = vpack.c.bf16 %v727_v6, %v727_v6  ;;  %v844_v9 = vsel %vm842_vm9, %v801_v5, 0  ;;  %v924_v25 = vunpack.c.l.b16 %v801_v5  ;;  %v1632_v6 = vld [vmem:[%s2258_s10] ss:$0 sm:$0xff] }
 0x1d4   : > { %853 = vmatpush.bf16.msrb.mxu0 %v844_v9 }
 0x1d5   : > { %v882_v10 = vunpack.c.l.b16 %v799_v7  ;;  %1470 = vmatmul.msk.bf16.vlgmr.msra.gmra.mxu3 %vm806_vm8, %v799_v7  ;;  %v2135_v28 = vpack.c.b16 %v924_v25, %v924_v25 }
 0x1d6   : > { %v797_v11 = vpop.f32.mrf.mxu2 }
 0x1d7   : > { %v883_v12 = vpack.c.b16 %v882_v10, %v882_v10 }
 0x1d8   : > { %v728_v13 = vpop.f32.mrf.mxu0  ;;  %963 = vmatpush.bf16.msra.mxu0 %v954_v46 }
 0x1d9   : > { %884 = vrot.lane.b32.xlu2 %v883_v12, %s1882_s17 }
 0x22b   : > { %v890_v14 = vpop.permute.xlu2 %889 }
 0x22c   : > { %v895_v15 = vsel %vm806_vm8, %v890_v14, 0 }
 0x22d   : > { %904 = vmatpush.bf16.xpose.msrb.mxu2 %v895_v15 }
 0x233   : > { %v885_v16 = vpop.permute.xlu2 %884 }
 0x234   : > { %1473 = vmatmul.msk.bf16.vlgmr.msrb.gmra.mxu2 %vm806_vm8, %v885_v16 }
 0x258   : > { %v822_v17 = vpop.f32.mrf.mxu3 }
 0x259   : > { %v826_v18 = vmul.f32 0.35355338, %v822_v17 }
 0x25b   : > { %v827_v19 = vsel %vm806_vm8, %v826_v18, -inf }
 0x25c   : > { %828 = vmax.xlane.f32.xlu0 %v827_v19 }
 0x260   : > { %v824_v20 = vpop.f32.mrf.mxu3 }
 0x2b7   : > { %v906_v21 = vpop.f32.mrf.mxu2 }
 0x2b8   : > { %v910_v22 = vmul.f32 0.35355338, %v906_v21 }
 0x2ba   : > { %v911_v23 = vsel %vm806_vm8, %v910_v22, -inf }
 0x2bb   : > { %912 = vmax.xlane.f32.xlu1 %v911_v23 }
 0x2bf   : > { %v908_v24 = vpop.f32.mrf.mxu2 }
 0x2cf   : > { %v829_v26 = vpop.xlane.xlu0 %828 }
 0x2d0   : > { %v830_v27 = vsub.f32 %v826_v18, %v829_v26 }
 0x2d2   : > { %v831_v29 = vmul.f32 1.442695, %v830_v27 }
 0x2d4   : > { %1643 = vpow2.f32 %v831_v29  ;;  %926 = vrot.lane.b32.xlu1 %v2135_v28, %s1882_s17 }
 0x2da   : > { %v1644_v30 = vpop.eup %1643 }
 0x2db   : > { %v833_v31 = vsel %vm806_vm8, %v1644_v30, 0.0 }
 0x2dc   : > { %970 = vrot.lane.b32.xlu1 %v883_v12, %s1883_s25  ;;  %834 = vadd.xlane.f32.xlu2 %v833_v31 }
 0x2e4   : > { %1050 = vrot.lane.b32.xlu1 %v883_v12, %s1884_s26 }
 0x32e   : > { %v913_v32 = vpop.xlane.xlu1 %912 }
 0x32f   : > { %v914_v33 = vsub.f32 %v910_v22, %v913_v32 }
 0x331   : > { %v915_v34 = vmul.f32 1.442695, %v914_v33 }
 0x333   : > { %1645 = vpow2.f32 %v915_v34 }
 0x339   : > { %v1646_v35 = vpop.eup %1645 }
 0x33a   : > { %v917_v36 = vsel %vm806_vm8, %v1646_v35, 0.0 }
 0x33b   : > { %918 = vadd.xlane.f32.xlu0 %v917_v36 }
 0x346   : > { %v927_v37 = vpop.permute.xlu1 %926 }
 0x347   : > { %v932_v38 = vsel %vm842_vm9, %v927_v37, 0  ;;  %v1029_v37 = vld [vmem:[#allocation7 + $0x8] sm:$0xf] }
 0x348   : > { %941 = vmatpush.bf16.msrb.mxu3 %v932_v38  ;;  %v1034_v38 = vsel %vm842_vm9, %v1029_v37, 0 }
 0x34c   : > { %1043 = vmatpush.bf16.msra.mxu3 %v1034_v38 }
 0x34e   : > { %v971_v58 = vpop.permute.xlu1 %970 }
 0x34f   : > { %972 = vrot.lane.b32.xlu0 %v888_v1, %s1883_s25  ;;  %v835_v39 = vpop.xlane.xlu2 %834 }
 0x350   : > { %1647 = vrcp.f32 %v835_v39 }
 0x356   : > { %v1648_v40 = vpop.eup %1647  ;;  %v1051_v62 = vpop.permute.xlu1 %1050 }
 0x357   : > { %v837_v41 = vmul.f32 %v1648_v40, %v1644_v30  ;;  %1052 = vrot.lane.b32.xlu0 %v888_v1, %s1884_s26  ;;  %v1109_v40 = vld [vmem:[#allocation7 + $0xc] sm:$0xf] }
 0x359   : > { %v838_v42 = vpack.c.bf16 %v837_v41, %v837_v41  ;;  %v1114_v41 = vsel %vm842_vm9, %v1109_v40, 0 }
 0x35b   : > { %1471 = vmatmul.msk.bf16.vlgmr.msrb.gmra.mxu0 %vm806_vm8, %v838_v42 }
 0x3ae   : > { %v919_v47 = vpop.xlane.xlu0 %918 }
 0x3af   : > { %1649 = vrcp.f32 %v919_v47 }
 0x3b5   : > { %v1650_v48 = vpop.eup %1649 }
 0x3b6   : > { %v921_v49 = vmul.f32 %v1650_v48, %v1646_v35 }
 0x3b8   : > { %v922_v50 = vpack.c.bf16 %v921_v49, %v921_v49 }
 0x3ba   : > { %1474 = vmatmul.msk.bf16.vlgmr.msrb.gmra.mxu3 %vm806_vm8, %v922_v50 }
 0x3c1   : > { %v973_v51 = vpop.permute.xlu0 %972 }
 0x3c2   : > { %v978_v52 = vsel %vm806_vm8, %v973_v51, 0 }
 0x3c3   : > { %987 = vmatpush.bf16.xpose.msra.mxu1 %v978_v52 }
 0x3c9   : > { %v1053_v53 = vpop.permute.xlu0 %1052 }
 0x3ca   : > { %v1058_v54 = vsel %vm806_vm8, %v1053_v53, 0 }
 0x3cb   : > { %1067 = vmatpush.bf16.xpose.msrb.mxu0 %v1058_v54 }
 0x3d8   : > { %v855_v55 = vpop.f32.mrf.mxu0 }
 0x3d9   : > { %v859_v56 = vpack.c.bf16 %v855_v55, %v855_v55 }
 0x3db   : > { %1472 = vmatmul.msk.bf16.vlgmr.msrb.gmra.mxu1 %vm806_vm8, %v859_v56 }
 0x3e0   : > { %v857_v57 = vpop.f32.mrf.mxu0 }
 0x3eb   : > { %1476 = vmatmul.msk.bf16.vlgmr.msra.gmra.mxu1 %vm806_vm8, %v971_v58 }
 0x43d   : > { %v943_v59 = vpop.f32.mrf.mxu3 }
 0x43e   : > { %v947_v60 = vpack.c.bf16 %v943_v59, %v943_v59 }
 0x440   : > { %1475 = vmatmul.msk.bf16.vlgmr.msra.gmra.mxu0 %vm806_vm8, %v947_v60 }
 0x445   : > { %v945_v61 = vpop.f32.mrf.mxu3 }
 0x446   : > { %v1520_v61 = vld [vmem:[#allocation8 + $0x8] sm:$0xff] }
 0x447   : > { %1193 = vmatpush.bf16.msrb.mxu3 %v1520_v61 }
 0x450   : > { %1479 = vmatmul.msk.bf16.vlgmr.msrb.gmra.mxu0 %vm806_vm8, %v1051_v62  ;;  %v1519_v62 = vld [vmem:[#allocation8] sm:$0xff] }
 0x451   : > { %1194 = vmatpush.bf16.msrb.mxu3 %v1519_v62 }
 0x458   : > { %v876_v63 = vpop.f32.mrf.mxu1 }
 0x459   : > { %v880_v7 = vadd.f32 %v1632_v6, %v876_v63 }
 0x460   : > { %v878_v1 = vpop.f32.mrf.mxu1 }
 0x468   : > { %v989_v2 = vpop.f32.mrf.mxu1 }
 0x469   : > { %v993_v3 = vmul.f32 0.35355338, %v989_v2 }
 0x46b   : > { %v994_v4 = vsel %vm806_vm8, %v993_v3, -inf }
 0x46c   : > { %995 = vmax.xlane.f32.xlu2 %v994_v4 }
 0x470   : > { %v991_v5 = vpop.f32.mrf.mxu1 }
 0x484   : > { %1006 = vrot.lane.b32.xlu2 %v2135_v28, %s1883_s25 }
 0x4bd   : > { %v965_v9 = vpop.f32.mrf.mxu0 }
 0x4be   : > { %v969_v10 = vadd.f32 %v965_v9, %v880_v7  ;;  %v1633_v9 = vld [vmem:[%s2259_s11] ss:$0 sm:$0xff] }
 0x4c5   : > { %v967_v11 = vpop.f32.mrf.mxu0 }
 0x4cd   : > { %v1069_v12 = vpop.f32.mrf.mxu0 }
 0x4ce   : > { %v1073_v13 = vmul.f32 0.35355338, %v1069_v12 }
 0x4d0   : > { %v1074_v14 = vsel %vm806_vm8, %v1073_v13, -inf }
 0x4d1   : > { %1075 = vmax.xlane.f32.xlu0 %v1074_v14 }
 0x4d5   : > { %v1071_v15 = vpop.f32.mrf.mxu0 }
 0x4d6   : > { %v1635_v15 = vld [vmem:[%s2302_s28] ss:$0 sm:$0xff]  ;;  %s2306_s28 = sld [smem:[#allocation30_spill]] }
 0x4dc   : > { %s2307_s20 = smov %s2306_s28  ;;  %s1312_s18 = scalar_lea.hbm %s2306_s28, %s1510_s1 }
 0x4dd   : > { %s1316_s16 = sshll.u32 %s1312_s18, 4  ;;  %s1317_s16 = int_to_ptr.hbm [resolvable:$true] %s1316_s16 }
 0x4de   : > { %s1797_s17 = sshra.s32 %s1317_s16, 4  ;;  %s1798_s17 = int_to_ptr.hbm [resolvable:$true] %s1797_s17 }
 0x4df   : > { %v996_v16 = vpop.xlane.xlu2 %995  ;;  %s1799_s25 = scalar_lea.hbm %s1798_s17, 8  ;;  %p1804_p5 = scmp.lt.s32.totalorder %s1798_s17, %s2307_s20 }
 0x4e0   : > { %v997_v17 = vsub.f32 %v993_v3, %v996_v16  ;;  %p1800_p1 = scmp.ne.s32.totalorder %s1798_s17, %s1799_s25 }
 0x4e2   : > { %v998_v18 = vmul.f32 1.442695, %v997_v17  ;;  %p1801_p2 = pnand %p1800_p1, %p2015_p4 }
 0x4e4   : > { %1651 = vpow2.f32 %v998_v18  ;;  %p1802_p3 = pneg %p1801_p2 }
 0x4e5   : > { %1086 = vrot.lane.b32.xlu0 %v2135_v28, %s1884_s26  ;;  %s2304_s26 = sld [smem:[#allocation16_spill]] }
 0x4e7   : > { %v1007_v19 = vpop.permute.xlu2 %1006 }
 0x4e8   : > { %v1012_v20 = vsel %vm842_vm9, %v1007_v19, 0 }
 0x4e9   : > { %1021 = vmatpush.bf16.msra.mxu2 %v1012_v20 }
 0x4ea   : > { %v1652_v21 = vpop.eup %1651 }
 0x4eb   : > { %v1000_v22 = vsel %vm806_vm8, %v1652_v21, 0.0  ;;  %s616_s24 = sand.u32 1, %s2304_s26  }
 0x4ec   : > { %1001 = vadd.xlane.f32.xlu1 %v1000_v22  ;;  %v1524_v22 = vld [vmem:[%s2303_s7 + $0x18] sm:$0xff]  ;;  %s1441_s29 = sshll.u32 %s616_s24, 3  ;;  %s1301_s27 = scalar_lea.sflag [#allocation4], %s616_s24 }
 0x4ed   : > { %1123 = vmatpush.bf16.msrb.mxu2 %v1114_v41  ;;  %1289 = vmatpush.bf16.msra.mxu0 %v1524_v22  ;;  %s618_s14 = scalar_lea.vmem [#allocation10], %s1441_s29  ;;  %s1803_s29 = scalar_lea.hbm %s2307_s20, 16 }
 0x4ee   : > { %s1314_s15 = sshll.u32 %s618_s14, 4  ;;  %p1805_p6 = scmp.lt.s32.totalorder %s1803_s29, %s1799_s25  ;;  %s1315_s15 = int_to_ptr.vmem [resolvable:$true] %s1314_s15 }
 0x4f0   : > { %p1806_p7 = por %p1805_p6, %p1804_p5 }
 0x4f2   : > { %p1807_p9 = pnand %p1806_p7, %p1802_p3 }
 0x544   : > { %v1076_v23 = vpop.xlane.xlu0 %1075 }
 0x545   : > { %v1077_v24 = vsub.f32 %v1073_v13, %v1076_v23 }
 0x547   : > { %v1078_v25 = vmul.f32 1.442695, %v1077_v24 }
 0x549   : > { %1653 = vpow2.f32 %v1078_v25 }
 0x54f   : > { %v1654_v26 = vpop.eup %1653 }
 0x550   : > { %v1080_v27 = vsel %vm806_vm8, %v1654_v26, 0.0 }
 0x551   : > { %1081 = vadd.xlane.f32.xlu2 %v1080_v27  ;;  %v1523_v27 = vld [vmem:[%s2303_s7 + $0x10] sm:$0xff] }
 0x552   : > { %1290 = vmatpush.bf16.msra.mxu0 %v1523_v27 }
 0x557   : > { %v1087_v29 = vpop.permute.xlu0 %1086 }
 0x558   : > { %v1092_v30 = vsel %vm842_vm9, %v1087_v29, 0 }
 0x559   : > { %1101 = vmatpush.bf16.msrb.mxu1 %v1092_v30 }
 0x55f   : > { %v1002_v28 = vpop.xlane.xlu1 %1001 }
 0x560   : > { %1655 = vrcp.f32 %v1002_v28 }
 0x566   : > { %v1656_v31 = vpop.eup %1655 }
 0x567   : > { %v1004_v32 = vmul.f32 %v1656_v31, %v1652_v21 }
 0x569   : > { %v1005_v33 = vpack.c.bf16 %v1004_v32, %v1004_v32  ;;  %v1522_v32 = vld [vmem:[%s2303_s7 + $0x8] sm:$0xff] }
 0x56a   : > { %1291 = vmatpush.bf16.msra.mxu0 %v1522_v32 }
 0x56b   : > { %1477 = vmatmul.msk.bf16.vlgmr.msra.gmra.mxu2 %vm806_vm8, %v1005_v33 }
 0x5c4   : > { %v1082_v34 = vpop.xlane.xlu2 %1081 }
 0x5c5   : > { %1657 = vrcp.f32 %v1082_v34 }
 0x5cb   : > { %v1658_v35 = vpop.eup %1657 }
 0x5cc   : > { %v1084_v36 = vmul.f32 %v1658_v35, %v1654_v26 }
 0x5ce   : > { %v1085_v39 = vpack.c.bf16 %v1084_v36, %v1084_v36  ;;  %v1521_v36 = vld [vmem:[%s2303_s7] sm:$0xff] }
 0x5cf   : > { %1292 = vmatpush.bf16.msra.mxu0 %v1521_v36 }
 0x5d0   : > { %1480 = vmatmul.msk.bf16.vlgmr.msrb.gmra.mxu1 %vm806_vm8, %v1085_v39 }
 0x5ee   : > { %v1023_v42 = vpop.f32.mrf.mxu2 }
 0x5ef   : > { %v1027_v43 = vpack.c.bf16 %v1023_v42, %v1023_v42 }
 0x5f1   : > { %1478 = vmatmul.msk.bf16.vlgmr.msra.gmra.mxu3 %vm806_vm8, %v1027_v43 }
 0x5f6   : > { %v1025_v44 = vpop.f32.mrf.mxu2 }
 0x64d   : > { %v1103_v45 = vpop.f32.mrf.mxu1 }
 0x64e   : > { %v1107_v46 = vpack.c.bf16 %v1103_v45, %v1103_v45 }
 0x650   : > { %1481 = vmatmul.msk.bf16.vlgmr.msrb.gmra.mxu2 %vm806_vm8, %v1107_v46 }
 0x655   : > { %v1105_v47 = vpop.f32.mrf.mxu1 }
 0x674   : > { %v1045_v48 = vpop.f32.mrf.mxu3 }
 0x675   : > { %v1049_v49 = vadd.f32 %v1045_v48, %v969_v10 }
 0x67c   : > { %v1047_v50 = vpop.f32.mrf.mxu3 }
 0x6d3   : > { %v1125_v51 = vpop.f32.mrf.mxu2 }
 0x6d4   : > { %v1129_v52 = vadd.f32 %v1125_v51, %v1049_v49 }
 0x6d6   : > { %v2176_v53 = vadd.f32 %v1129_v52, %v2085_v0 }
 0x6d8   : > { %v1133_v54 = vsel %vm628_vm0, %v2176_v53, 0.0 }
 0x6d9   : > { %1134 = vadd.xlane.f32.xlu1 %v1133_v54 }
 0x6db   : > { %v1127_v55 = vpop.f32.mrf.mxu2 }
 0x74c   : > { %v1135_v56 = vpop.xlane.xlu1 %1134 }
 0x74d   : > { %v1136_v57 = vmul.f32 %v1135_v56, %v2089_v8 }
 0x74f   : > { %v1137_v58 = vsub.f32 %v2176_v53, %v1136_v57 }
 0x751   : > { %v1138_v59 = vmul.f32 %v1137_v58, %v1137_v58 }
 0x753   : > { %v1139_v60 = vsel %vm628_vm0, %v1138_v59, 0.0 }
 0x754   : > { %1140 = vadd.xlane.f32.xlu1 %v1139_v60 }
 0x7c7   : > { %v1141_v0 = vpop.xlane.xlu1 %1140 }
 0x7c8   : > { %v1142_v63 = vmul.f32 %v1141_v0, %v2089_v8  ;;  %v1634_v8 = vld [vmem:[%s2260_s12] ss:$0 sm:$0xff] }
 0x7ca   : > { %v1143_v1 = vadd.f32 1e-05, %v1142_v63  ;;  %v1636_v63 = vld [vmem:[%s2305_s23] ss:$0 sm:$0xff] }
 0x7cc   : > { %1659 = vrsqrt.f32 %v1143_v1  ;;  %vm1150_vm11 = vweird.f32 %v1143_v1 }
 0x7d2   : > { %v1660_v2 = vpop.eup %1659 }
 0x7d3   : > { %v1145_v3 = vmul.f32 %v1660_v2, %v1143_v1  ;;  %vm1151_vm10 = vweird.f32 %v1660_v2 }
 0x7d4   : > { %vm1152_vm12 = vmor %vm1150_vm11, %vm1151_vm10 }
 0x7d5   : > { %v1146_v4 = vmul.f32 %v1660_v2, %v1145_v3 }
 0x7d7   : > { %v1147_v5 = vmul.f32 0.5, %v1146_v4 }
 0x7d9   : > { %v1148_v6 = vsub.f32 1.5, %v1147_v5 }
 0x7db   : > { %v1149_v7 = vmul.f32 %v1660_v2, %v1148_v6 }
 0x7dd   : > { %v1153_v10 = vsel %vm1152_vm12, %v1660_v2, %v1149_v7 }
 0x7de   : > { %v1154_v11 = vmul.f32 %v1153_v10, %v1137_v58 }
 0x7e0   : > { %v1158_v12 = vmul.f32 %v1633_v9, %v1154_v11 }
 0x7e2   : > { %v1162_v13 = vadd.f32 %v1634_v8, %v1158_v12 }
 0x7e4   : > { %v1163_v14 = vpack.c.bf16 %v1162_v13, %v1162_v13 }
 0x7e6   : > { %1490 = vmatmul.msk.bf16.vlgmr.msrb.gmra.mxu3 %vm628_vm0, %v1163_v14 }
 0x869   : > { %v1196_v16 = vpop.f32.mrf.mxu3 }
 0x86a   : > { %v1197_v17 = vadd.f32 %v1635_v15, %v1196_v16 }
 0x86c   : > { %v1201_v18 = vmul.f32 0.70710677, %v1197_v17  ;;  %v1200_v60 = vmul.f32 0.5, %v1197_v17 }
 0x86e   : > { %v1202_v19 = vmul.f32 %v1201_v18, %v1201_v18 }
 0x870   : > { %v1203_v20 = vmin.f32 %v1202_v19, 16.0 }
 0x871   : > { %v1198_v21 = vpop.f32.mrf.mxu3 }
 0x872   : > { %v1204_v23 = vmul.f32 2.1237322e-06, %v1203_v20  ;;  %v1215_v24 = vmul.f32 3.8918573e-05, %v1203_v20 }
 0x874   : > { %v1205_v25 = vadd.f32 0.00028619796, %v1204_v23  ;;  %v1216_v26 = vadd.f32 0.001143296, %v1215_v24 }
 0x876   : > { %v1206_v29 = vmul.f32 %v1205_v25, %v1203_v20  ;;  %v1217_v30 = vmul.f32 %v1216_v26, %v1203_v20 }
 0x878   : > { %v1218_v28 = vadd.f32 0.014752088, %v1217_v30  ;;  %v1207_v31 = vadd.f32 0.0036580483, %v1206_v29 }
 0x87a   : > { %v1219_v33 = vmul.f32 %v1218_v28, %v1203_v20  ;;  %v1208_v35 = vmul.f32 %v1207_v31, %v1203_v20 }
 0x87c   : > { %v1220_v34 = vadd.f32 0.112945676, %v1219_v33  ;;  %v1209_v39 = vadd.f32 0.05243302, %v1208_v35 }
 0x87e   : > { %v1221_v37 = vmul.f32 %v1220_v34, %v1203_v20  ;;  %v1210_v42 = vmul.f32 %v1209_v39, %v1203_v20 }
 0x880   : > { %v1222_v38 = vadd.f32 0.4994258, %v1221_v37  ;;  %v1211_v43 = vadd.f32 0.18741608, %v1210_v42 }
 0x882   : > { %v1223_v40 = vmul.f32 %v1222_v38, %v1203_v20  ;;  %v1212_v45 = vmul.f32 %v1211_v43, %v1203_v20 }
 0x884   : > { %v1224_v41 = vadd.f32 1.0, %v1223_v40  ;;  %v1213_v49 = vadd.f32 1.1283791, %v1212_v45 }
 0x886   : > { %1661 = vrcp.f32 %v1224_v41  ;;  %v1236_v48 = vand.u32 2147483648, %v1224_v41  ;;  %v1234_v51 = vand.u32 2147483647, %v1224_v41  ;;  %vm1230_vm14 = vweird.f32 %v1224_v41 }
 0x887   : > { %v1214_v55 = vmul.f32 %v1213_v49, %v1201_v18 }
 0x888   : > { %v1237_v54 = vor.u32 1.1754944e-38, %v1236_v48  ;;  %vm1235_vm1 = vcmp.eq.f32.partialorder %v1234_v51, 8.507059e+37 }
 0x88c   : > { %v1662_v44 = vpop.eup %1661 }
 0x88d   : > { %v1226_v46 = vmul.f32 %v1662_v44, %v1224_v41  ;;  %vm1231_vm13 = vweird.f32 %v1662_v44 }
 0x88e   : > { %vm1232_vm15 = vmor %vm1230_vm14, %vm1231_vm13 }
 0x88f   : > { %v1227_v47 = vsub.f32 1.0, %v1226_v46 }
 0x891   : > { %v1228_v50 = vmul.f32 %v1662_v44, %v1227_v47 }
 0x893   : > { %v1229_v52 = vadd.f32 %v1662_v44, %v1228_v50 }
 0x895   : > { %v1233_v56 = vsel %vm1232_vm15, %v1662_v44, %v1229_v52 }
 0x896   : > { %v1238_v57 = vsel %vm1235_vm1, %v1237_v54, %v1233_v56 }
 0x897   : > { %v1239_v58 = vmul.f32 %v1238_v57, %v1214_v55 }
 0x899   : > { %v1491_v59 = vclamps-f32 %v1239_v58, 1.0 }
 0x89b   : > { %v1242_v61 = vadd.f32 1.0, %v1491_v59 }
 0x89d   : > { %v1243_v62 = vmul.f32 %v1242_v61, %v1200_v60 }
 0x89f   : > { %v1244_v0 = vpack.c.bf16 %v1243_v62, %v1243_v62 }
 0x8a1   : > { %1508 = vmatmul.msk.bf16.vlgmr.msra.gmra.mxu0 %vm1281_vm2, %v1244_v0 }
 0x91e   : > { %v1294_v1 = vpop.f32.mrf.mxu0 }
 0x91f   : > { %v1295_v2 = vadd.f32 %v1636_v63, %v1294_v1 }
 0x921   : > { %v1298_v3 = vadd.f32 %v1295_v2, %v2176_v53 }
 0x923   : > { %1299 = vst.msk [vmem:[%s618_s14] sm:$0xff] %vm628_vm0, %v1298_v3 }
 0x924   : > { %1810 = shalt.err (!%p1807_p9)
}
 0x925   : > { %1541 = dma.vmem_to_hbm [thread:$0]  (%p2015_p4), %s1315_s15, 128, %s1317_s16, %s1301_s27  }
 0x926   : > { %v1296_v53 = vpop.f32.mrf.mxu0 }
 0x927 PF: > { %s2309_s24 = sld [smem:[#allocation19_spill]] }
 0x928   : > { %s2310_s23 = sld [smem:[#allocation15_spill]] }
 0x92d   : > { %p1568_p10 = scmp.ge.s32.totalorder %s2309_s24, 2 }
 0x92e   : > { %s1328_s30 = sand.u32 1, %s2310_s23  }
 0x92f   : > { %p1557_p11 = pnand %p1568_p10, %p2022_p8  ;;  %s1329_s28 = scalar_lea.sflag [#allocation4], %s1328_s30 }
 0x931   : > { %p1558_p12 = pneg %p1557_p11 }
 0x933   : > { %1848 = dma.done.wait (%p1558_p12), %s1329_s28, 128  }
 0x934   : > { %1850 = vsyncadd (%p1558_p12), %s1329_s28, 4294967168  ;;  %s33_s29 = sadd.s32 1, %s2309_s24   ;;  %s2312_s24 = sld [smem:[#allocation16_spill]] }
 0x935   : > { %p30_p13 = scmp.ge.s32.totalorder %s33_s29, 4   ;;  %s2313_s25 = sld [smem:[#allocation17_spill]] }
 0x936   : > { %s2314_s26 = sld [smem:[#allocation23_spill]] }
 0x937   : > { %s2315_s27 = sld [smem:[#allocation18_spill]]  ;;  %32 = sbr.rel (!%p30_p13) target bundleno = 15 (0xf), region = 144 }
 0x938   : > { %s2316_s28 = sld [smem:[#allocation20_spill]] }
 0x93c   :  { %1335 = vsyncpa [#allocation3], 1 }
 0x93d   :  { %1337 = vsyncpa [#allocation3 + $0x1], 1 }
 0x93e   :  { %1338 = vsyncpa [#allocation6], 1 }
 0x93f   :  { %1339 = vsyncpa [#allocation9], 1 }
 0x940   :  { %1340 = vsyncpa [#allocation4], 1 }
 0x941   :  { %1342 = vsyncpa [#allocation4 + $0x1], 1 }

// kernel: tpu_custom_call.1
= control target key start
LH: loop header
LB: loop body
LE: loop exit
PB: predicated region body
PF: predicated region fallthrough
CT: control target
= control target key end

     0   :  { %s2248_s0 = inlined_call_operand.vmem [shape: f32[2,8,32], index: 0, kind: input, shape index: {}]   ;;  %s2249_s1 = inlined_call_operand.hbm [shape: f32[1,32], index: 1, kind: input, shape index: {}]   ;;  %s2250_s2 = inlined_call_operand.vmem [shape: f32[1,32], index: 2, kind: input, shape index: {}]   ;;  %s2251_s3 = inlined_call_operand.vmem [shape: bf16[32,32], index: 3, kind: input, shape index: {}]   ;;  %s2252_s4 = inlined_call_operand.vmem [shape: f32[1,32], index: 4, kind: input, shape index: {}]   ;;  %s2253_s5 = inlined_call_operand.vmem [shape: bf16[32,32], index: 5, kind: input, shape index: {}]   ;;  %s2254_s6 = inlined_call_operand.vmem [shape: f32[1,32], index: 6, kind: input, shape index: {}]   ;;  %s2255_s7 = inlined_call_operand.hbm [shape: bf16[32,32], index: 7, kind: input, shape index: {}]   ;;  %s2256_s8 = inlined_call_operand.vmem [shape: f32[1,32], index: 8, kind: input, shape index: {}]   ;;  %s2257_s9 = inlined_call_operand.hbm [shape: bf16[4,8,32], index: 9, kind: input, shape index: {}]   ;;  %s2258_s10 = inlined_call_operand.vmem [shape: f32[1,32], index: 10, kind: input, shape index: {}]   ;;  %s2259_s11 = inlined_call_operand.vmem [shape: f32[1,32], index: 11, kind: input, shape index: {}]   ;;  %s2260_s12 = inlined_call_operand.vmem [shape: f32[1,32], index: 12, kind: input, shape index: {}]   ;;  %s2261_s13 = inlined_call_operand.hbm [shape: bf16[32,64], index: 13, kind: input, shape index: {}]   ;;  %s2262_s14 = inlined_call_operand.vmem [shape: f32[1,64], index: 14, kind: input, shape index: {}]   ;;  %s2263_s15 = inlined_call_operand.vmem [shape: bf16[64,32], index: 15, kind: input, shape index: {}]   ;;  %s2264_s16 = inlined_call_operand.vmem [shape: f32[1,32], index: 16, kind: input, shape index: {}]   ;;  %s2265_s17 = inlined_call_operand.hbm [shape: f32[2,8,32], index: 17, kind: output, shape index: {}]  }
   0x1   :  { %2278 = sst [smem:[#allocation24_spill]] %s2248_s0 }
   0x2   :  { %2279 = sst [smem:[#allocation25_spill]] %s2249_s1 }
   0x3   :  { %2280 = sst [smem:[#allocation26_spill]] %s2255_s7 }
   0x4   :  { %2281 = sst [smem:[#allocation27_spill]] %s2262_s14 }
   0x5   :  { %2282 = sst [smem:[#allocation28_spill]] %s2263_s15 }
   0x6   :  { %2283 = sst [smem:[#allocation29_spill]] %s2264_s16 }
   0x7   :  { %2284 = sst [smem:[#allocation30_spill]] %s2265_s17 }
   0x8   :  { %22 = vsyncpa [#allocation3], 0 }
   0x9   :  { %23 = vsyncpa [#allocation6], 0 }
   0xa   :  { %24 = vsyncpa [#allocation9], 0 }
   0xb   :  { %25 = vsyncpa [#allocation4], 0 }
   0xc   :  { %27 = vsyncpa [#allocation4 + $0x1], 0  ;;  %s1975_s24 = smov 0   ;;  %s1977_s25 = smov 0  }
   0xd   :  { %s1979_s26 = smov 0   ;;  %s1981_s27 = smov 0  }
   0xe   :  { %s1983_s28 = smov 0   ;;  %s1985_s29 = smov 0  }
   0xf LB: > { %2285 = sst [smem:[#allocation15_spill]] %s1853_s24  ;;  %s1428_s0 = sadd.s32 4294967295, %s1873_s29   ;;  %s1873_s29 = sphi %s1985_s29, %s33_s29   ;;  %s1869_s28 = sphi %s1983_s28, %s2316_s28   ;;  %s1865_s27 = sphi %s1981_s27, %s2315_s27   ;;  %s1861_s26 = sphi %s1979_s26, %s2314_s26   ;;  %s1857_s25 = sphi %s1977_s25, %s2313_s25   ;;  %s1853_s24 = sphi %s1975_s24, %s2312_s24  }
  0x10   : > { %2286 = sst [smem:[#allocation16_spill]] %s1857_s25  ;;  %s1429_s30 = sadd.s32 4294967294, %s1873_s29  }
  0x11   : > { %2287 = sst [smem:[#allocation17_spill]] %s1861_s26  ;;  %s45_s18 = sadd.s32 1, %s1869_s28 }
  0x12   : > { %2288 = sst [smem:[#allocation18_spill]] %s1869_s28  ;;  %s416_s19 = sadd.s32 1, %s1861_s26 }
  0x13   : > { %2289 = sst [smem:[#allocation19_spill]] %s1873_s29  ;;  %p47_p0 = scmp.ge.s32.totalorder %s45_s18, 2 }
  0x14   : > { %p426_p1 = scmp.ne.s32.totalorder %s1861_s26, %s1857_s25  ;;  %p427_p2 = scmp.eq.s32.totalorder %s1428_s0, 1 }
  0x15   : > { %p432_p3 = scmp.ne.s32.totalorder %s1857_s25, %s1853_s24  ;;  %s2318_s18 = smov (%p47_p0, %s45_s18), 0 }
  0x16   : > { %2290 = sst [smem:[#allocation20_spill]] %s2318_s18  ;;  %p2015_p4 = por %p427_p2, %p426_p1 }
  0x17   : > { %p433_p5 = scmp.eq.s32.totalorder %s1429_s30, 1  ;;  %s411_s20 = ssub.s32 %s1869_s28, %s2318_s18 }
  0x18   : > { %s2291_s1 = scalar_select %p2015_p4, 1, 0 }
  0x19   : > { %p1430_p6 = scmp.ge.s32.totalorder %s1873_s29, 1  ;;  %p414_p7 = scmp.eq.s32.totalorder %s411_s20, 0 }
  0x1a   : > { %2292 = sst [smem:[#allocation21_spill]] %s2291_s1  ;;  %p2022_p8 = por %p433_p5, %p432_p3 }
  0x1b   : > { %p440_p9 = scmp.lt.s32.totalorder %s1873_s29, 3  ;;  %p2034_p11 = scmp.eq.s32.totalorder %s1428_s0, 0 }
  0x1c   : > { %s2293_s21 = scalar_select %p2022_p8, 1, 0 }
  0x1d   : > { %s2028_s22 = scalar_select %p414_p7, %s1861_s26, %s416_s19  }
  0x1e   : > { %2294 = sst [smem:[#allocation22_spill]] %s2293_s21  ;;  %p2030_p10 = pnand %p1430_p6, %p440_p9 }
  0x1f   : > { %2295 = sst [smem:[#allocation23_spill]] %s2028_s22  ;;  %s1875_s28 = smov [#allocation5]  }
  0x20   : > { %s2298_s7 = sld [smem:[#allocation26_spill]]  ;;  %p1543_p12 = pneg %p2030_p10 }
  0x21   : > { %s480_s19 = sshll.u32 %s1875_s28, 4  ;;  %s1876_s0 = smov 64   ;;  %s481_s19 = int_to_ptr.vmem [resolvable:$true] %s480_s19 }
  0x22   : > { %p2045_p13 = pnand %p2034_p11, %p1543_p12  ;;  %s1877_s26 = smov 4  }
  0x23   : > { %s1878_s28 = smov [#allocation2]   ;;  %s495_s16 = sshll.u32 %s2257_s9, 4  ;;  %s496_s16 = int_to_ptr.hbm [resolvable:$true] %s495_s16 }
  0x24   : > { %s454_s29 = sshll.u32 %s1878_s28, 4  ;;  %s1879_s25 = smov [#allocation7]   ;;  %s455_s29 = int_to_ptr.vmem [resolvable:$true] %s454_s29 }
  0x25   : > { %s497_s15 = sshll.u32 %s1879_s25, 4  ;;  %s498_s15 = int_to_ptr.vmem [resolvable:$true] %s497_s15 }
  0x26   : > { %s478_s20 = sshll.u32 %s2298_s7, 4  ;;  %s2300_s7 = sld [smem:[#allocation25_spill]]  ;;  %s479_s20 = int_to_ptr.hbm [resolvable:$true] %s478_s20 }
  0x27   : > { %1549 = dma.hbm_to_vmem [thread:$0]  (!%p2045_p13), %s479_s20, 256, %s481_s19, [#allocation6], %s1876_s0, %s1876_s0, %s1877_s26  }
  0x28   : > { %s518_s19 = sshll.u32 %s2261_s13, 4  ;;  %s519_s19 = int_to_ptr.hbm [resolvable:$true] %s518_s19 }
  0x29   : > { %1552 = dma.hbm_to_vmem [thread:$0]  (!%p2045_p13), %s496_s16, 256, %s498_s15, [#allocation6], %s1876_s0, %s1876_s0, %s1877_s26  }
  0x2b   : > { %552 = sbr.rel (%p2030_p10) target bundleno = 2343 (0x927), region = 88 }
  0x2c   : > { %s452_s21 = sshll.u32 %s2300_s7, 4  ;;  %s1880_s7 = smov [#allocation8]   ;;  %s453_s21 = int_to_ptr.hbm [resolvable:$true] %s452_s21 }
  0x2d   : > { %1546 = dma.hbm_to_vmem [thread:$0]  (!%p2045_p13), %s453_s21, 16, %s455_s29, [#allocation3]  }
  0x2e   : > { %s520_s18 = sshll.u32 %s1880_s7, 4  ;;  %s521_s18 = int_to_ptr.vmem [resolvable:$true] %s520_s18 }
  0x2f   : > { %1555 = dma.hbm_to_vmem [thread:$0]  (!%p2045_p13), %s519_s19, 256, %s521_s18, [#allocation9], %s1876_s0, %s1876_s0, %s1877_s26  }
  0x30   : > { %1836 = dma.done.wait (%p2034_p11), [#allocation3], 16  }
  0x31   : > { %1838 = vsyncadd (%p2034_p11), [#allocation3], 4294967280 }
  0x32   : > { %1840 = dma.done.wait (%p2034_p11), [#allocation6], 512  }
  0x33   : > { %1842 = vsyncadd (%p2034_p11), [#allocation6], 4294966784 }
  0x34   : > { %1844 = dma.done.wait (%p2034_p11), [#allocation9], 256  }
  0x35   : > { %1846 = vsyncadd (%p2034_p11), [#allocation9], 4294967040  ;;  %p619_p0 = scmp.lt.s32.totalorder %s1865_s27, 1  ;;  %s2301_s25 = sld [smem:[#allocation24_spill]]  ;;  %vm628_vm0 = vcmask 261120   ;;  %v1881_v2 = vmov 32.0  }
  0x36   : > { %1637 = vrcp.f32 %v1881_v2  ;;  %v1516_v19 = vld [vmem:[%s2253_s5 + $0x8] sm:$0xff]  ;;  %v1515_v21 = vld [vmem:[%s2253_s5] sm:$0xff]  ;;  %vm806_vm8 = vcmask 64512   ;;  %vm842_vm9 = vcmask 1043456   ;;  %s1882_s17 = smov 120   ;;  %s2302_s28 = sld [smem:[#allocation27_spill]] }
  0x37   : > { %s620_s14 = scalar_select %p619_p0, %s1865_s27, 1  ;;  %v1518_v20 = vld [vmem:[#allocation5 + $0x8] sm:$0xff]  ;;  %759 = vmatpush.bf16.msra.mxu1 %v1516_v19  ;;  %v1517_v22 = vld [vmem:[#allocation5] sm:$0xff]  ;;  %v1627_v39 = vld [vmem:[#allocation2] ss:$0 sm:$0xff] }
  0x38   : > { %792 = vmatpush.bf16.msra.mxu2 %v1518_v20  ;;  %v1514_v23 = vld [vmem:[%s2251_s3 + $0x8] sm:$0xff]  ;;  %v1513_v25 = vld [vmem:[%s2251_s3] sm:$0xff]  ;;  %s2303_s7 = sld [smem:[#allocation28_spill]]  ;;  %s1510_s1 = sshll.u32 %s1865_s27, 3 }
  0x39   : > { %s1442_s15 = sshll.u32 %s620_s14, 3  ;;  %723 = vmatpush.bf16.msra.mxu0 %v1514_v23  ;;  %v1628_v43 = vld [vmem:[%s2250_s2] ss:$0 sm:$0xff]  ;;  %s2305_s23 = sld [smem:[#allocation29_spill]] }
  0x3a   : > { %v1629_v55 = vld [vmem:[%s2254_s6] ss:$0 sm:$0xff] }
  0x3b   : > { %s622_s26 = scalar_lea.vmem %s2301_s25, %s1442_s15  ;;  %760 = vmatpush.bf16.msra.mxu1 %v1515_v21  ;;  %v1630_v59 = vld [vmem:[%s2256_s8] ss:$0 sm:$0xff]  ;;  %s1883_s25 = smov 112  }
  0x3c   : > { %v2085_v0 = vld [vmem:[%s622_s26] sm:$0xff]  ;;  %v1638_v3 = vpop.eup %1637  ;;  %793 = vmatpush.bf16.msra.mxu2 %v1517_v22  ;;  %s1884_s26 = smov 104  }
  0x3d   : > { %v629_v1 = vsel %vm628_vm0, %v2085_v0, 0.0  ;;  %v633_v4 = vmul.f32 32.0, %v1638_v3  ;;  %vm637_vm1 = vweird.f32 %v1638_v3  ;;  %724 = vmatpush.bf16.msra.mxu0 %v1513_v25  ;;  %v1631_v62 = vld [vmem:[%s2252_s4] ss:$0 sm:$0xff] }
  0x3e   : > { %630 = vadd.xlane.f32.xlu0 %v629_v1 }
  0x3f   : > { %v634_v5 = vsub.f32 1.0, %v633_v4 }
  0x41   : > { %v635_v6 = vmul.f32 %v1638_v3, %v634_v5 }
  0x43   : > { %v636_v7 = vadd.f32 %v1638_v3, %v635_v6 }
  0x45   : > { %v2089_v8 = vsel %vm637_vm1, %v1638_v3, %v636_v7 }
  0x46   : > { %670 = vadd.xlane.f32.xlu0 %v629_v1 }
  0xb1   : > { %v631_v9 = vpop.xlane.xlu0 %630 }
  0xb2   : > { %v639_v10 = vmul.f32 %v2089_v8, %v631_v9 }
  0xb4   : > { %v640_v11 = vsub.f32 %v2085_v0, %v639_v10 }
  0xb6   : > { %v641_v12 = vmul.f32 %v640_v11, %v640_v11 }
  0xb8   : > { %v642_v13 = vsel %vm628_vm0, %v641_v12, 0.0 }
  0xb9   : > { %643 = vadd.xlane.f32.xlu1 %v642_v13  ;;  %v671_v14 = vpop.xlane.xlu0 %670 }
  0xba   : > { %v672_v15 = vmul.f32 %v671_v14, %v2089_v8 }
  0xbc   : > { %v673_v16 = vsub.f32 %v2085_v0, %v672_v15 }
  0xbe   : > { %v674_v17 = vmul.f32 %v673_v16, %v673_v16 }
  0xc0   : > { %v675_v18 = vsel %vm628_vm0, %v674_v17, 0.0 }
  0xc1   : > { %676 = vadd.xlane.f32.xlu1 %v675_v18 }
 0x12c   : > { %v644_v24 = vpop.xlane.xlu1 %643 }
 0x12d   : > { %v645_v26 = vmul.f32 %v644_v24, %v2089_v8 }
 0x12f   : > { %v646_v27 = vadd.f32 1e-05, %v645_v26 }
 0x131   : > { %1639 = vrsqrt.f32 %v646_v27  ;;  %vm653_vm3 = vweird.f32 %v646_v27 }
 0x134   : > { %v677_v28 = vpop.xlane.xlu1 %676 }
 0x135   : > { %v678_v29 = vmul.f32 %v677_v28, %v2089_v8 }
 0x137   : > { %v1640_v30 = vpop.eup %1639  ;;  %v679_v31 = vadd.f32 1e-05, %v678_v29 }
 0x138   : > { %v648_v32 = vmul.f32 %v1640_v30, %v646_v27  ;;  %vm654_vm2 = vweird.f32 %v1640_v30 }
 0x139   : > { %1641 = vrsqrt.f32 %v679_v31  ;;  %vm655_vm4 = vmor %vm653_vm3, %vm654_vm2  ;;  %vm686_vm6 = vweird.f32 %v679_v31  ;;  %vm1281_vm2 = vcmask 523264  }
 0x13a   : > { %v649_v33 = vmul.f32 %v1640_v30, %v648_v32 }
 0x13c   : > { %v650_v34 = vmul.f32 0.5, %v649_v33 }
 0x13e   : > { %v651_v35 = vsub.f32 1.5, %v650_v34 }
 0x13f   : > { %v1642_v36 = vpop.eup %1641 }
 0x140   : > { %v652_v37 = vmul.f32 %v1640_v30, %v651_v35  ;;  %v681_v38 = vmul.f32 %v1642_v36, %v679_v31  ;;  %vm687_vm5 = vweird.f32 %v1642_v36 }
 0x141   : > { %vm688_vm7 = vmor %vm686_vm6, %vm687_vm5 }
 0x142   : > { %v656_v40 = vsel %vm655_vm4, %v1640_v30, %v652_v37  ;;  %v682_v41 = vmul.f32 %v1642_v36, %v681_v38 }
 0x143   : > { %v657_v42 = vmul.f32 %v656_v40, %v640_v11 }
 0x144   : > { %v683_v44 = vmul.f32 0.5, %v682_v41 }
 0x145   : > { %v661_v45 = vmul.f32 %v1627_v39, %v657_v42 }
 0x146   : > { %v684_v46 = vsub.f32 1.5, %v683_v44 }
 0x147   : > { %v665_v47 = vadd.f32 %v1628_v43, %v661_v45  ;;  %v949_v45 = vld [vmem:[#allocation7 + $0x4] sm:$0xf] }
 0x148   : > { %v685_v48 = vmul.f32 %v1642_v36, %v684_v46  ;;  %v954_v46 = vsel %vm842_vm9, %v949_v45, 0 }
 0x149   : > { %v666_v49 = vpack.c.bf16 %v665_v47, %v665_v47 }
 0x14a   : > { %v689_v50 = vsel %vm688_vm7, %v1642_v36, %v685_v48 }
 0x14b   : > { %1460 = vmatmul.msk.bf16.vlgmr.msra.gmra.mxu1 %vm628_vm0, %v666_v49  ;;  %1469 = vmatmul.msk.bf16.vlgmr.msra.gmra.mxu2 %vm628_vm0, %v666_v49  ;;  %v690_v51 = vmul.f32 %v689_v50, %v673_v16 }
 0x14d   : > { %v691_v52 = vmul.f32 %v1627_v39, %v690_v51 }
 0x14f   : > { %v692_v53 = vadd.f32 %v1628_v43, %v691_v52  ;;  %v860_v43 = vld [vmem:[#allocation7] sm:$0xf] }
 0x150   : > { %v865_v44 = vsel %vm842_vm9, %v860_v43, 0 }
 0x151   : > { %v693_v54 = vpack.c.bf16 %v692_v53, %v692_v53  ;;  %874 = vmatpush.bf16.msrb.mxu1 %v865_v44 }
 0x153   : > { %1451 = vmatmul.msk.bf16.vlgmr.msra.gmra.mxu0 %vm628_vm0, %v693_v54 }
 0x1c8   : > { %v762_v56 = vpop.f32.mrf.mxu1 }
 0x1c9   : > { %v763_v57 = vadd.f32 %v1629_v55, %v762_v56 }
 0x1cb   : > { %v800_v58 = vpack.c.bf16 %v763_v57, %v763_v57 }
 0x1cd   : > { %v887_v60 = vunpack.c.l.b16 %v800_v58  ;;  %v811_v61 = vsel %vm806_vm8, %v800_v58, 0 }
 0x1ce   : > { %v795_v63 = vpop.f32.mrf.mxu2  ;;  %820 = vmatpush.bf16.xpose.msra.mxu3 %v811_v61 }
 0x1cf   : > { %v888_v1 = vpack.c.b16 %v887_v60, %v887_v60  ;;  %v796_v2 = vadd.f32 %v1630_v59, %v795_v63 }
 0x1d0   : > { %v726_v3 = vpop.f32.mrf.mxu0  ;;  %v764_v4 = vpop.f32.mrf.mxu1 }
 0x1d1   : > { %v801_v5 = vpack.c.bf16 %v796_v2, %v796_v2  ;;  %v727_v6 = vadd.f32 %v1631_v62, %v726_v3  ;;  %889 = vrot.lane.b32.xlu2 %v888_v1, %s1882_s17 }
 0x1d3   : > { %v799_v7 = vpack.c.bf16 %v727_v6, %v727_v6  ;;  %v844_v9 = vsel %vm842_vm9, %v801_v5, 0  ;;  %v924_v25 = vunpack.c.l.b16 %v801_v5  ;;  %v1632_v6 = vld [vmem:[%s2258_s10] ss:$0 sm:$0xff] }
 0x1d4   : > { %853 = vmatpush.bf16.msrb.mxu0 %v844_v9 }
 0x1d5   : > { %v882_v10 = vunpack.c.l.b16 %v799_v7  ;;  %1470 = vmatmul.msk.bf16.vlgmr.msra.gmra.mxu3 %vm806_vm8, %v799_v7  ;;  %v2135_v28 = vpack.c.b16 %v924_v25, %v924_v25 }
 0x1d6   : > { %v797_v11 = vpop.f32.mrf.mxu2 }
 0x1d7   : > { %v883_v12 = vpack.c.b16 %v882_v10, %v882_v10 }
 0x1d8   : > { %v728_v13 = vpop.f32.mrf.mxu0  ;;  %963 = vmatpush.bf16.msra.mxu0 %v954_v46 }
 0x1d9   : > { %884 = vrot.lane.b32.xlu2 %v883_v12, %s1882_s17 }
 0x22b   : > { %v890_v14 = vpop.permute.xlu2 %889 }
 0x22c   : > { %v895_v15 = vsel %vm806_vm8, %v890_v14, 0 }
 0x22d   : > { %904 = vmatpush.bf16.xpose.msrb.mxu2 %v895_v15 }
 0x233   : > { %v885_v16 = vpop.permute.xlu2 %884 }
 0x234   : > { %1473 = vmatmul.msk.bf16.vlgmr.msrb.gmra.mxu2 %vm806_vm8, %v885_v16 }
 0x258   : > { %v822_v17 = vpop.f32.mrf.mxu3 }
 0x259   : > { %v826_v18 = vmul.f32 0.35355338, %v822_v17 }
 0x25b   : > { %v827_v19 = vsel %vm806_vm8, %v826_v18, -inf }
 0x25c   : > { %828 = vmax.xlane.f32.xlu0 %v827_v19 }
 0x260   : > { %v824_v20 = vpop.f32.mrf.mxu3 }
 0x2b7   : > { %v906_v21 = vpop.f32.mrf.mxu2 }
 0x2b8   : > { %v910_v22 = vmul.f32 0.35355338, %v906_v21 }
 0x2ba   : > { %v911_v23 = vsel %vm806_vm8, %v910_v22, -inf }
 0x2bb   : > { %912 = vmax.xlane.f32.xlu1 %v911_v23 }
 0x2bf   : > { %v908_v24 = vpop.f32.mrf.mxu2 }
 0x2cf   : > { %v829_v26 = vpop.xlane.xlu0 %828 }
 0x2d0   : > { %v830_v27 = vsub.f32 %v826_v18, %v829_v26 }
 0x2d2   : > { %v831_v29 = vmul.f32 1.442695, %v830_v27 }
 0x2d4   : > { %1643 = vpow2.f32 %v831_v29  ;;  %926 = vrot.lane.b32.xlu1 %v2135_v28, %s1882_s17 }
 0x2da   : > { %v1644_v30 = vpop.eup %1643 }
 0x2db   : > { %v833_v31 = vsel %vm806_vm8, %v1644_v30, 0.0 }
 0x2dc   : > { %970 = vrot.lane.b32.xlu1 %v883_v12, %s1883_s25  ;;  %834 = vadd.xlane.f32.xlu2 %v833_v31 }
 0x2e4   : > { %1050 = vrot.lane.b32.xlu1 %v883_v12, %s1884_s26 }
 0x32e   : > { %v913_v32 = vpop.xlane.xlu1 %912 }
 0x32f   : > { %v914_v33 = vsub.f32 %v910_v22, %v913_v32 }
 0x331   : > { %v915_v34 = vmul.f32 1.442695, %v914_v33 }
 0x333   : > { %1645 = vpow2.f32 %v915_v34 }
 0x339   : > { %v1646_v35 = vpop.eup %1645 }
 0x33a   : > { %v917_v36 = vsel %vm806_vm8, %v1646_v35, 0.0 }
 0x33b   : > { %918 = vadd.xlane.f32.xlu0 %v917_v36 }
 0x346   : > { %v927_v37 = vpop.permute.xlu1 %926 }
 0x347   : > { %v932_v38 = vsel %vm842_vm9, %v927_v37, 0  ;;  %v1029_v37 = vld [vmem:[#allocation7 + $0x8] sm:$0xf] }
 0x348   : > { %941 = vmatpush.bf16.msrb.mxu3 %v932_v38  ;;  %v1034_v38 = vsel %vm842_vm9, %v1029_v37, 0 }
 0x34c   : > { %1043 = vmatpush.bf16.msra.mxu3 %v1034_v38 }
 0x34e   : > { %v971_v58 = vpop.permute.xlu1 %970 }
 0x34f   : > { %972 = vrot.lane.b32.xlu0 %v888_v1, %s1883_s25  ;;  %v835_v39 = vpop.xlane.xlu2 %834 }
 0x350   : > { %1647 = vrcp.f32 %v835_v39 }
 0x356   : > { %v1648_v40 = vpop.eup %1647  ;;  %v1051_v62 = vpop.permute.xlu1 %1050 }
 0x357   : > { %v837_v41 = vmul.f32 %v1648_v40, %v1644_v30  ;;  %1052 = vrot.lane.b32.xlu0 %v888_v1, %s1884_s26  ;;  %v1109_v40 = vld [vmem:[#allocation7 + $0xc] sm:$0xf] }
 0x359   : > { %v838_v42 = vpack.c.bf16 %v837_v41, %v837_v41  ;;  %v1114_v41 = vsel %vm842_vm9, %v1109_v40, 0 }
 0x35b   : > { %1471 = vmatmul.msk.bf16.vlgmr.msrb.gmra.mxu0 %vm806_vm8, %v838_v42 }
 0x3ae   : > { %v919_v47 = vpop.xlane.xlu0 %918 }
 0x3af   : > { %1649 = vrcp.f32 %v919_v47 }
 0x3b5   : > { %v1650_v48 = vpop.eup %1649 }
 0x3b6   : > { %v921_v49 = vmul.f32 %v1650_v48, %v1646_v35 }
 0x3b8   : > { %v922_v50 = vpack.c.bf16 %v921_v49, %v921_v49 }
 0x3ba   : > { %1474 = vmatmul.msk.bf16.vlgmr.msrb.gmra.mxu3 %vm806_vm8, %v922_v50 }
 0x3c1   : > { %v973_v51 = vpop.permute.xlu0 %972 }
 0x3c2   : > { %v978_v52 = vsel %vm806_vm8, %v973_v51, 0 }
 0x3c3   : > { %987 = vmatpush.bf16.xpose.msra.mxu1 %v978_v52 }
 0x3c9   : > { %v1053_v53 = vpop.permute.xlu0 %1052 }
 0x3ca   : > { %v1058_v54 = vsel %vm806_vm8, %v1053_v53, 0 }
 0x3cb   : > { %1067 = vmatpush.bf16.xpose.msrb.mxu0 %v1058_v54 }
 0x3d8   : > { %v855_v55 = vpop.f32.mrf.mxu0 }
 0x3d9   : > { %v859_v56 = vpack.c.bf16 %v855_v55, %v855_v55 }
 0x3db   : > { %1472 = vmatmul.msk.bf16.vlgmr.msrb.gmra.mxu1 %vm806_vm8, %v859_v56 }
 0x3e0   : > { %v857_v57 = vpop.f32.mrf.mxu0 }
 0x3eb   : > { %1476 = vmatmul.msk.bf16.vlgmr.msra.gmra.mxu1 %vm806_vm8, %v971_v58 }
 0x43d   : > { %v943_v59 = vpop.f32.mrf.mxu3 }
 0x43e   : > { %v947_v60 = vpack.c.bf16 %v943_v59, %v943_v59 }
 0x440   : > { %1475 = vmatmul.msk.bf16.vlgmr.msra.gmra.mxu0 %vm806_vm8, %v947_v60 }
 0x445   : > { %v945_v61 = vpop.f32.mrf.mxu3 }
 0x446   : > { %v1520_v61 = vld [vmem:[#allocation8 + $0x8] sm:$0xff] }
 0x447   : > { %1193 = vmatpush.bf16.msrb.mxu3 %v1520_v61 }
 0x450   : > { %1479 = vmatmul.msk.bf16.vlgmr.msrb.gmra.mxu0 %vm806_vm8, %v1051_v62  ;;  %v1519_v62 = vld [vmem:[#allocation8] sm:$0xff] }
 0x451   : > { %1194 = vmatpush.bf16.msrb.mxu3 %v1519_v62 }
 0x458   : > { %v876_v63 = vpop.f32.mrf.mxu1 }
 0x459   : > { %v880_v7 = vadd.f32 %v1632_v6, %v876_v63 }
 0x460   : > { %v878_v1 = vpop.f32.mrf.mxu1 }
 0x468   : > { %v989_v2 = vpop.f32.mrf.mxu1 }
 0x469   : > { %v993_v3 = vmul.f32 0.35355338, %v989_v2 }
 0x46b   : > { %v994_v4 = vsel %vm806_vm8, %v993_v3, -inf }
 0x46c   : > { %995 = vmax.xlane.f32.xlu2 %v994_v4 }
 0x470   : > { %v991_v5 = vpop.f32.mrf.mxu1 }
 0x484   : > { %1006 = vrot.lane.b32.xlu2 %v2135_v28, %s1883_s25 }
 0x4bd   : > { %v965_v9 = vpop.f32.mrf.mxu0 }
 0x4be   : > { %v969_v10 = vadd.f32 %v965_v9, %v880_v7  ;;  %v1633_v9 = vld [vmem:[%s2259_s11] ss:$0 sm:$0xff] }
 0x4c5   : > { %v967_v11 = vpop.f32.mrf.mxu0 }
 0x4cd   : > { %v1069_v12 = vpop.f32.mrf.mxu0 }
 0x4ce   : > { %v1073_v13 = vmul.f32 0.35355338, %v1069_v12 }
 0x4d0   : > { %v1074_v14 = vsel %vm806_vm8, %v1073_v13, -inf }
 0x4d1   : > { %1075 = vmax.xlane.f32.xlu0 %v1074_v14 }
 0x4d5   : > { %v1071_v15 = vpop.f32.mrf.mxu0 }
 0x4d6   : > { %v1635_v15 = vld [vmem:[%s2302_s28] ss:$0 sm:$0xff]  ;;  %s2306_s28 = sld [smem:[#allocation30_spill]] }
 0x4dc   : > { %s2307_s20 = smov %s2306_s28  ;;  %s1312_s18 = scalar_lea.hbm %s2306_s28, %s1510_s1 }
 0x4dd   : > { %s1316_s16 = sshll.u32 %s1312_s18, 4  ;;  %s1317_s16 = int_to_ptr.hbm [resolvable:$true] %s1316_s16 }
 0x4de   : > { %s1797_s17 = sshra.s32 %s1317_s16, 4  ;;  %s1798_s17 = int_to_ptr.hbm [resolvable:$true] %s1797_s17 }
 0x4df   : > { %v996_v16 = vpop.xlane.xlu2 %995  ;;  %s1799_s25 = scalar_lea.hbm %s1798_s17, 8  ;;  %p1804_p5 = scmp.lt.s32.totalorder %s1798_s17, %s2307_s20 }
 0x4e0   : > { %v997_v17 = vsub.f32 %v993_v3, %v996_v16  ;;  %p1800_p1 = scmp.ne.s32.totalorder %s1798_s17, %s1799_s25 }
 0x4e2   : > { %v998_v18 = vmul.f32 1.442695, %v997_v17  ;;  %p1801_p2 = pnand %p1800_p1, %p2015_p4 }
 0x4e4   : > { %1651 = vpow2.f32 %v998_v18  ;;  %p1802_p3 = pneg %p1801_p2 }
 0x4e5   : > { %1086 = vrot.lane.b32.xlu0 %v2135_v28, %s1884_s26  ;;  %s2304_s26 = sld [smem:[#allocation16_spill]] }
 0x4e7   : > { %v1007_v19 = vpop.permute.xlu2 %1006 }
 0x4e8   : > { %v1012_v20 = vsel %vm842_vm9, %v1007_v19, 0 }
 0x4e9   : > { %1021 = vmatpush.bf16.msra.mxu2 %v1012_v20 }
 0x4ea   : > { %v1652_v21 = vpop.eup %1651 }
 0x4eb   : > { %v1000_v22 = vsel %vm806_vm8, %v1652_v21, 0.0  ;;  %s616_s24 = sand.u32 1, %s2304_s26  }
 0x4ec   : > { %1001 = vadd.xlane.f32.xlu1 %v1000_v22  ;;  %v1524_v22 = vld [vmem:[%s2303_s7 + $0x18] sm:$0xff]  ;;  %s1441_s29 = sshll.u32 %s616_s24, 3  ;;  %s1301_s27 = scalar_lea.sflag [#allocation4], %s616_s24 }
 0x4ed   : > { %1123 = vmatpush.bf16.msrb.mxu2 %v1114_v41  ;;  %1289 = vmatpush.bf16.msra.mxu0 %v1524_v22  ;;  %s618_s14 = scalar_lea.vmem [#allocation10], %s1441_s29  ;;  %s1803_s29 = scalar_lea.hbm %s2307_s20, 16 }
 0x4ee   : > { %s1314_s15 = sshll.u32 %s618_s14, 4  ;;  %p1805_p6 = scmp.lt.s32.totalorder %s1803_s29, %s1799_s25  ;;  %s1315_s15 = int_to_ptr.vmem [resolvable:$true] %s1314_s15 }
 0x4f0   : > { %p1806_p7 = por %p1805_p6, %p1804_p5 }
 0x4f2   : > { %p1807_p9 = pnand %p1806_p7, %p1802_p3 }
 0x544   : > { %v1076_v23 = vpop.xlane.xlu0 %1075 }
 0x545   : > { %v1077_v24 = vsub.f32 %v1073_v13, %v1076_v23 }
 0x547   : > { %v1078_v25 = vmul.f32 1.442695, %v1077_v24 }
 0x549   : > { %1653 = vpow2.f32 %v1078_v25 }
 0x54f   : > { %v1654_v26 = vpop.eup %1653 }
 0x550   : > { %v1080_v27 = vsel %vm806_vm8, %v1654_v26, 0.0 }
 0x551   : > { %1081 = vadd.xlane.f32.xlu2 %v1080_v27  ;;  %v1523_v27 = vld [vmem:[%s2303_s7 + $0x10] sm:$0xff] }
 0x552   : > { %1290 = vmatpush.bf16.msra.mxu0 %v1523_v27 }
 0x557   : > { %v1087_v29 = vpop.permute.xlu0 %1086 }
 0x558   : > { %v1092_v30 = vsel %vm842_vm9, %v1087_v29, 0 }
 0x559   : > { %1101 = vmatpush.bf16.msrb.mxu1 %v1092_v30 }
 0x55f   : > { %v1002_v28 = vpop.xlane.xlu1 %1001 }
 0x560   : > { %1655 = vrcp.f32 %v1002_v28 }
 0x566   : > { %v1656_v31 = vpop.eup %1655 }
 0x567   : > { %v1004_v32 = vmul.f32 %v1656_v31, %v1652_v21 }
 0x569   : > { %v1005_v33 = vpack.c.bf16 %v1004_v32, %v1004_v32  ;;  %v1522_v32 = vld [vmem:[%s2303_s7 + $0x8] sm:$0xff] }
 0x56a   : > { %1291 = vmatpush.bf16.msra.mxu0 %v1522_v32 }
 0x56b   : > { %1477 = vmatmul.msk.bf16.vlgmr.msra.gmra.mxu2 %vm806_vm8, %v1005_v33 }
 0x5c4   : > { %v1082_v34 = vpop.xlane.xlu2 %1081 }
 0x5c5   : > { %1657 = vrcp.f32 %v1082_v34 }
 0x5cb   : > { %v1658_v35 = vpop.eup %1657 }
 0x5cc   : > { %v1084_v36 = vmul.f32 %v1658_v35, %v1654_v26 }
 0x5ce   : > { %v1085_v39 = vpack.c.bf16 %v1084_v36, %v1084_v36  ;;  %v1521_v36 = vld [vmem:[%s2303_s7] sm:$0xff] }
 0x5cf   : > { %1292 = vmatpush.bf16.msra.mxu0 %v1521_v36 }
 0x5d0   : > { %1480 = vmatmul.msk.bf16.vlgmr.msrb.gmra.mxu1 %vm806_vm8, %v1085_v39 }
 0x5ee   : > { %v1023_v42 = vpop.f32.mrf.mxu2 }
 0x5ef   : > { %v1027_v43 = vpack.c.bf16 %v1023_v42, %v1023_v42 }
 0x5f1   : > { %1478 = vmatmul.msk.bf16.vlgmr.msra.gmra.mxu3 %vm806_vm8, %v1027_v43 }
 0x5f6   : > { %v1025_v44 = vpop.f32.mrf.mxu2 }
 0x64d   : > { %v1103_v45 = vpop.f32.mrf.mxu1 }
 0x64e   : > { %v1107_v46 = vpack.c.bf16 %v1103_v45, %v1103_v45 }
 0x650   : > { %1481 = vmatmul.msk.bf16.vlgmr.msrb.gmra.mxu2 %vm806_vm8, %v1107_v46 }
 0x655   : > { %v1105_v47 = vpop.f32.mrf.mxu1 }
 0x674   : > { %v1045_v48 = vpop.f32.mrf.mxu3 }
 0x675   : > { %v1049_v49 = vadd.f32 %v1045_v48, %v969_v10 }
 0x67c   : > { %v1047_v50 = vpop.f32.mrf.mxu3 }
 0x6d3   : > { %v1125_v51 = vpop.f32.mrf.mxu2 }
 0x6d4   : > { %v1129_v52 = vadd.f32 %v1125_v51, %v1049_v49 }
 0x6d6   : > { %v2176_v53 = vadd.f32 %v1129_v52, %v2085_v0 }
 0x6d8   : > { %v1133_v54 = vsel %vm628_vm0, %v2176_v53, 0.0 }
 0x6d9   : > { %1134 = vadd.xlane.f32.xlu1 %v1133_v54 }
 0x6db   : > { %v1127_v55 = vpop.f32.mrf.mxu2 }
 0x74c   : > { %v1135_v56 = vpop.xlane.xlu1 %1134 }
 0x74d   : > { %v1136_v57 = vmul.f32 %v1135_v56, %v2089_v8 }
 0x74f   : > { %v1137_v58 = vsub.f32 %v2176_v53, %v1136_v57 }
 0x751   : > { %v1138_v59 = vmul.f32 %v1137_v58, %v1137_v58 }
 0x753   : > { %v1139_v60 = vsel %vm628_vm0, %v1138_v59, 0.0 }
 0x754   : > { %1140 = vadd.xlane.f32.xlu1 %v1139_v60 }
 0x7c7   : > { %v1141_v0 = vpop.xlane.xlu1 %1140 }
 0x7c8   : > { %v1142_v63 = vmul.f32 %v1141_v0, %v2089_v8  ;;  %v1634_v8 = vld [vmem:[%s2260_s12] ss:$0 sm:$0xff] }
 0x7ca   : > { %v1143_v1 = vadd.f32 1e-05, %v1142_v63  ;;  %v1636_v63 = vld [vmem:[%s2305_s23] ss:$0 sm:$0xff] }
 0x7cc   : > { %1659 = vrsqrt.f32 %v1143_v1  ;;  %vm1150_vm11 = vweird.f32 %v1143_v1 }
 0x7d2   : > { %v1660_v2 = vpop.eup %1659 }
 0x7d3   : > { %v1145_v3 = vmul.f32 %v1660_v2, %v1143_v1  ;;  %vm1151_vm10 = vweird.f32 %v1660_v2 }
 0x7d4   : > { %vm1152_vm12 = vmor %vm1150_vm11, %vm1151_vm10 }
 0x7d5   : > { %v1146_v4 = vmul.f32 %v1660_v2, %v1145_v3 }
 0x7d7   : > { %v1147_v5 = vmul.f32 0.5, %v1146_v4 }
 0x7d9   : > { %v1148_v6 = vsub.f32 1.5, %v1147_v5 }
 0x7db   : > { %v1149_v7 = vmul.f32 %v1660_v2, %v1148_v6 }
 0x7dd   : > { %v1153_v10 = vsel %vm1152_vm12, %v1660_v2, %v1149_v7 }
 0x7de   : > { %v1154_v11 = vmul.f32 %v1153_v10, %v1137_v58 }
 0x7e0   : > { %v1158_v12 = vmul.f32 %v1633_v9, %v1154_v11 }
 0x7e2   : > { %v1162_v13 = vadd.f32 %v1634_v8, %v1158_v12 }
 0x7e4   : > { %v1163_v14 = vpack.c.bf16 %v1162_v13, %v1162_v13 }
 0x7e6   : > { %1490 = vmatmul.msk.bf16.vlgmr.msrb.gmra.mxu3 %vm628_vm0, %v1163_v14 }
 0x869   : > { %v1196_v16 = vpop.f32.mrf.mxu3 }
 0x86a   : > { %v1197_v17 = vadd.f32 %v1635_v15, %v1196_v16 }
 0x86c   : > { %v1201_v18 = vmul.f32 0.70710677, %v1197_v17  ;;  %v1200_v60 = vmul.f32 0.5, %v1197_v17 }
 0x86e   : > { %v1202_v19 = vmul.f32 %v1201_v18, %v1201_v18 }
 0x870   : > { %v1203_v20 = vmin.f32 %v1202_v19, 16.0 }
 0x871   : > { %v1198_v21 = vpop.f32.mrf.mxu3 }
 0x872   : > { %v1204_v23 = vmul.f32 2.1237322e-06, %v1203_v20  ;;  %v1215_v24 = vmul.f32 3.8918573e-05, %v1203_v20 }
 0x874   : > { %v1205_v25 = vadd.f32 0.00028619796, %v1204_v23  ;;  %v1216_v26 = vadd.f32 0.001143296, %v1215_v24 }
 0x876   : > { %v1206_v29 = vmul.f32 %v1205_v25, %v1203_v20  ;;  %v1217_v30 = vmul.f32 %v1216_v26, %v1203_v20 }
 0x878   : > { %v1218_v28 = vadd.f32 0.014752088, %v1217_v30  ;;  %v1207_v31 = vadd.f32 0.0036580483, %v1206_v29 }
 0x87a   : > { %v1219_v33 = vmul.f32 %v1218_v28, %v1203_v20  ;;  %v1208_v35 = vmul.f32 %v1207_v31, %v1203_v20 }
 0x87c   : > { %v1220_v34 = vadd.f32 0.112945676, %v1219_v33  ;;  %v1209_v39 = vadd.f32 0.05243302, %v1208_v35 }
 0x87e   : > { %v1221_v37 = vmul.f32 %v1220_v34, %v1203_v20  ;;  %v1210_v42 = vmul.f32 %v1209_v39, %v1203_v20 }
 0x880   : > { %v1222_v38 = vadd.f32 0.4994258, %v1221_v37  ;;  %v1211_v43 = vadd.f32 0.18741608, %v1210_v42 }
 0x882   : > { %v1223_v40 = vmul.f32 %v1222_v38, %v1203_v20  ;;  %v1212_v45 = vmul.f32 %v1211_v43, %v1203_v20 }
 0x884   : > { %v1224_v41 = vadd.f32 1.0, %v1223_v40  ;;  %v1213_v49 = vadd.f32 1.1283791, %v1212_v45 }
 0x886   : > { %1661 = vrcp.f32 %v1224_v41  ;;  %v1236_v48 = vand.u32 2147483648, %v1224_v41  ;;  %v1234_v51 = vand.u32 2147483647, %v1224_v41  ;;  %vm1230_vm14 = vweird.f32 %v1224_v41 }
 0x887   : > { %v1214_v55 = vmul.f32 %v1213_v49, %v1201_v18 }
 0x888   : > { %v1237_v54 = vor.u32 1.1754944e-38, %v1236_v48  ;;  %vm1235_vm1 = vcmp.eq.f32.partialorder %v1234_v51, 8.507059e+37 }
 0x88c   : > { %v1662_v44 = vpop.eup %1661 }
 0x88d   : > { %v1226_v46 = vmul.f32 %v1662_v44, %v1224_v41  ;;  %vm1231_vm13 = vweird.f32 %v1662_v44 }
 0x88e   : > { %vm1232_vm15 = vmor %vm1230_vm14, %vm1231_vm13 }
 0x88f   : > { %v1227_v47 = vsub.f32 1.0, %v1226_v46 }
 0x891   : > { %v1228_v50 = vmul.f32 %v1662_v44, %v1227_v47 }
 0x893   : > { %v1229_v52 = vadd.f32 %v1662_v44, %v1228_v50 }
 0x895   : > { %v1233_v56 = vsel %vm1232_vm15, %v1662_v44, %v1229_v52 }
 0x896   : > { %v1238_v57 = vsel %vm1235_vm1, %v1237_v54, %v1233_v56 }
 0x897   : > { %v1239_v58 = vmul.f32 %v1238_v57, %v1214_v55 }
 0x899   : > { %v1491_v59 = vclamps-f32 %v1239_v58, 1.0 }
 0x89b   : > { %v1242_v61 = vadd.f32 1.0, %v1491_v59 }
 0x89d   : > { %v1243_v62 = vmul.f32 %v1242_v61, %v1200_v60 }
 0x89f   : > { %v1244_v0 = vpack.c.bf16 %v1243_v62, %v1243_v62 }
 0x8a1   : > { %1508 = vmatmul.msk.bf16.vlgmr.msra.gmra.mxu0 %vm1281_vm2, %v1244_v0 }
 0x91e   : > { %v1294_v1 = vpop.f32.mrf.mxu0 }
 0x91f   : > { %v1295_v2 = vadd.f32 %v1636_v63, %v1294_v1 }
 0x921   : > { %v1298_v3 = vadd.f32 %v1295_v2, %v2176_v53 }
 0x923   : > { %1299 = vst.msk [vmem:[%s618_s14] sm:$0xff] %vm628_vm0, %v1298_v3 }
 0x924   : > { %1810 = shalt.err (!%p1807_p9)
}
 0x925   : > { %1541 = dma.vmem_to_hbm [thread:$0]  (%p2015_p4), %s1315_s15, 128, %s1317_s16, %s1301_s27  }
 0x926   : > { %v1296_v53 = vpop.f32.mrf.mxu0 }
 0x927 PF: > { %s2309_s24 = sld [smem:[#allocation19_spill]] }
 0x928   : > { %s2310_s23 = sld [smem:[#allocation15_spill]] }
 0x92d   : > { %p1568_p10 = scmp.ge.s32.totalorder %s2309_s24, 2 }
 0x92e   : > { %s1328_s30 = sand.u32 1, %s2310_s23  }
 0x92f   : > { %p1557_p11 = pnand %p1568_p10, %p2022_p8  ;;  %s1329_s28 = scalar_lea.sflag [#allocation4], %s1328_s30 }
 0x931   : > { %p1558_p12 = pneg %p1557_p11 }
 0x933   : > { %1848 = dma.done.wait (%p1558_p12), %s1329_s28, 128  }
 0x934   : > { %1850 = vsyncadd (%p1558_p12), %s1329_s28, 4294967168  ;;  %s33_s29 = sadd.s32 1, %s2309_s24   ;;  %s2312_s24 = sld [smem:[#allocation16_spill]] }
 0x935   : > { %p30_p13 = scmp.ge.s32.totalorder %s33_s29, 4   ;;  %s2313_s25 = sld [smem:[#allocation17_spill]] }
 0x936   : > { %s2314_s26 = sld [smem:[#allocation23_spill]] }
 0x937   : > { %s2315_s27 = sld [smem:[#allocation18_spill]]  ;;  %32 = sbr.rel (!%p30_p13) target bundleno = 15 (0xf), region = 144 }
 0x938   : > { %s2316_s28 = sld [smem:[#allocation20_spill]] }
 0x93c   :  { %1335 = vsyncpa [#allocation3], 1 }
 0x93d   :  { %1337 = vsyncpa [#allocation3 + $0x1], 1 }
 0x93e   :  { %1338 = vsyncpa [#allocation6], 1 }
 0x93f   :  { %1339 = vsyncpa [#allocation9], 1 }
 0x940   :  { %1340 = vsyncpa [#allocation4], 1 }
 0x941   :  { %1342 = vsyncpa [#allocation4 + $0x1], 1 }

</bundles_post_ra>
